<compile_context>
chip_gen: v5e
topology: v5e:2x2
jax: 0.10.0
libtpu: 0.0.40
codegen_flags: <defaults>
</compile_context>

<pallas_src>
import functools
import math

import jax
import jax.numpy as jnp
from jax.experimental import pallas as pl
from jax.experimental.pallas import tpu as pltpu


def _round_up(x, m):
    return ((x + m - 1) // m) * m


def _pick_batch_tile(B, max_tile=128):
    """Rows per grid step: multiple of 8, <=128 (fills the v5e MXU).  For
    mid-size batches split into two steps so the v7x megacore has work for
    both TensorCores."""
    if B <= 8:
        return 8
    if B <= 2 * max_tile:
        return min(_round_up((B + 1) // 2, 8), max_tile)
    return max_tile


# ----------------------------------------------------------------------------
# Fused forward kernel.  One grid step = TB batch rows.
# ref order: z, kv, sel, sel_t, [mdl1 augs], q_aug, kv_aug, o_aug,
#            [mdl2 augs], adj_front, adj_back, node_front, node_back,
#            adj_out, node_out
# Each "aug" block packs W at rows [0:din] and bias at row round_up(din,8);
# head "front" blocks additionally pack LN gamma/beta at +8 / +16 rows.
# ----------------------------------------------------------------------------
def _fused_generator_kernel(*refs, mdl1_dins, mdl2_dins, mha_dim, head_dims):
    f32 = jnp.float32
    z_ref, kv_ref, sel_ref, selt_ref = refs[:4]
    adj_out, node_out = refs[-2], refs[-1]
    it = iter(refs[4:-2])

    def aug_linear(x, ref, din):
        dpad = _round_up(din, 8)
        return (jnp.dot(x, ref[0:din, :], preferred_element_type=f32)
                + ref[dpad:dpad + 1, :])

    # ---- MultiDenseLayer(z): relu(x @ W + b) per layer (dropout = identity)
    x = z_ref[...]                                                  # (TB, zd)
    for din in mdl1_dins:
        x = jnp.maximum(aug_linear(x, next(it), din), 0.0)

    # ---- single-query multi-head attention (batch_first, query length 1).
    # No per-head / per-row loops: scores and the head->lane broadcast are two
    # block-diagonal-indicator matmuls with the precomputed sel / sel_t.
    E = mha_dim
    TB = x.shape[0]
    kv = kv_ref[...]                                                # (TB,L,E)
    L = kv.shape[1]
    q_aug, kv_aug, o_aug = next(it), next(it), next(it)

    q = aug_linear(x, q_aug, E)                  # (TB, E); 1/sqrt(dh) folded
    kvf = kv.reshape(TB * L, E)
    kvp = aug_linear(kvf, kv_aug, E)             # (TB*L, 2E) fused K|V proj
    k = kvp[:, :E]
    v = kvp[:, E:]

    hp = sel_ref.shape[1]                                           # padded H
    kq = (k.reshape(TB, L, E) * q[:, None, :]).reshape(TB * L, E)
    s = jnp.dot(kq, sel_ref[...], preferred_element_type=f32)       # (TB*L,hp)
    s = s.reshape(TB, L, hp)
    s = s - jnp.max(s, axis=1, keepdims=True)                       # key axis
    p = jnp.exp(s)
    p = p / jnp.sum(p, axis=1, keepdims=True)
    pe = jnp.dot(p.reshape(TB * L, hp), selt_ref[...],
                 preferred_element_type=f32)                        # (TB*L, E)
    attn = jnp.sum(pe.reshape(TB, L, E) * v.reshape(TB, L, E), axis=1)
    x = aug_linear(attn, o_aug, E)                                  # (TB, E)

    # ---- MultiDenseLayer_2
    for din in mdl2_dins:
        x = jnp.maximum(aug_linear(x, next(it), din), 0.0)

    # ---- output heads: Linear -> LayerNorm -> ReLU -> Linear (lane-dense,
    # adj head already includes the 0.5*(A + A^T) symmetrization fold).
    d2, adj_hidden, node_hidden = head_dims

    def emit_head(out_ref, front_ref, back_ref, dhid):
        dpad = _round_up(d2, 8)
        h = (jnp.dot(x, front_ref[0:d2, :], preferred_element_type=f32)
             + front_ref[dpad:dpad + 1, :])
        g = front_ref[dpad + 8:dpad + 9, :]
        beta = front_ref[dpad + 16:dpad + 17, :]
        mu = jnp.mean(h, axis=-1, keepdims=True)
        var = jnp.mean(jnp.square(h - mu), axis=-1, keepdims=True)
        hn = (h - mu) * jax.lax.rsqrt(var + 1e-5)
        hn = jnp.maximum(hn * g + beta, 0.0)
        out_ref[...] = aug_linear(hn, back_ref, dhid)

    emit_head(adj_out, next(it), next(it), adj_hidden)
    emit_head(node_out, next(it), next(it), node_hidden)


# ----------------------------------------------------------------------------
# One-time parameter preparation (hoisted out of the per-call path).
# ----------------------------------------------------------------------------
def _pad_cols(x, to):
    return jnp.pad(x, ((0, 0), (0, to - x.shape[1])))


def _pack_linear(w, b):
    din, dout = w.shape
    dpad = _round_up(din, 8)
    buf = jnp.zeros((dpad + 8, dout), jnp.float32)
    buf = buf.at[:din, :].set(w.astype(jnp.float32))
    buf = buf.at[dpad, :].set(jnp.reshape(b, (dout,)).astype(jnp.float32))
    return buf


def _pack_head_front(w1, b1, gamma, beta):
    din, dout = w1.shape
    dpad = _round_up(din, 8)
    buf = jnp.zeros((dpad + 24, dout), jnp.float32)
    buf = buf.at[:din, :].set(w1.astype(jnp.float32))
    buf = buf.at[dpad, :].set(jnp.reshape(b1, (dout,)))
    buf = buf.at[dpad + 8, :].set(jnp.reshape(gamma, (dout,)))
    buf = buf.at[dpad + 16, :].set(jnp.reshape(beta, (dout,)))
    return buf


def _prepare_params(params, *, N, n_heads):
    mha = params["mha"]
    E = mha["wq"].shape[0]
    assert E % n_heads == 0
    dh = E // n_heads
    scale = 1.0 / math.sqrt(dh)
    hp = _round_up(n_heads, 8)

    # Block-diagonal head selectors, precomputed once (loop-invariant).
    sel = (jnp.arange(E)[:, None] // dh ==
           jnp.arange(hp)[None, :]).astype(jnp.float32)            # (E, hp)
    sel_t = sel.T                                                   # (hp, E)

    flat = [sel, sel_t]
    mdl1_dins = []
    for l in params["mdl1"]:
        mdl1_dins.append(l["w"].shape[0])
        flat.append(_pack_linear(l["w"], l["b"]))

    # Fold softmax scale into q projection; fuse K|V projections.
    flat.append(_pack_linear(mha["wq"] * scale, mha["bq"] * scale))
    flat.append(_pack_linear(jnp.concatenate([mha["wk"], mha["wv"]], axis=1),
                             jnp.concatenate([mha["bk"], mha["bv"]], axis=1)))
    flat.append(_pack_linear(mha["wo"], mha["bo"]))

    mdl2_dins = []
    for l in params["mdl2"]:
        mdl2_dins.append(l["w"].shape[0])
        flat.append(_pack_linear(l["w"], l["b"]))

    d2 = int(params["mdl2"][-1]["w"].shape[1])

    # adj head: fold 0.5*(A + A^T) into w2/b2, pad to lane-dense width.
    adj = params["adj_head"]
    pad_adj = _round_up(N * N, 128)
    idx = jnp.arange(N * N)
    perm = (idx % N) * N + idx // N
    w2 = 0.5 * (adj["w2"] + adj["w2"][:, perm])
    b2 = 0.5 * (adj["b2"] + adj["b2"][:, perm])
    flat.append(_pack_head_front(adj["w1"], adj["b1"], adj["gamma"], adj["beta"]))
    flat.append(_pack_linear(_pad_cols(w2, pad_adj), _pad_cols(b2, pad_adj)))

    node = params["node_head"]
    pad_node = _round_up(N, 128)
    flat.append(_pack_head_front(node["w1"], node["b1"],
                                 node["gamma"], node["beta"]))
    flat.append(_pack_linear(_pad_cols(node["w2"], pad_node),
                             _pad_cols(node["b2"], pad_node)))

    meta = dict(
        N=N, mha_dim=E,
        mdl1_dins=tuple(mdl1_dins), mdl2_dins=tuple(mdl2_dins),
        d2=d2,
        adj_hidden=int(adj["w1"].shape[1]),
        node_hidden=int(node["w1"].shape[1]),
        pad_adj=pad_adj, pad_node=pad_node,
    )
    return tuple(flat), meta


# ----------------------------------------------------------------------------
# Forward (mode == 0): one fused, batch-tiled pallas_call.
# ----------------------------------------------------------------------------
def _forward(flat, z, bert_out, meta):
    B, z_dim = z.shape
    _, L, E = bert_out.shape
    assert E == meta["mha_dim"]

    TB = _pick_batch_tile(B)
    B_pad = _round_up(B, TB)
    if B_pad != B:
        z = jnp.pad(z, ((0, B_pad - B), (0, 0)))
        bert_out = jnp.pad(bert_out, ((0, B_pad - B), (0, 0), (0, 0)))

    pad_adj, pad_node = meta["pad_adj"], meta["pad_node"]

    in_specs = [
        pl.BlockSpec((TB, z_dim), lambda b: (b, 0)),
        pl.BlockSpec((TB, L, E), lambda b: (b, 0, 0)),
    ]
    # Weights: full-array blocks, constant block index -> DMA'd once, resident.
    in_specs += [pl.BlockSpec(w.shape, lambda b: (0, 0)) for w in flat]

    kernel = functools.partial(
        _fused_generator_kernel,
        mdl1_dins=meta["mdl1_dins"],
        mdl2_dins=meta["mdl2_dins"],
        mha_dim=E,
        head_dims=(meta["d2"], meta["adj_hidden"], meta["node_hidden"]),
    )

    adj_p, node_p = pl.pallas_call(
        kernel,
        out_shape=(jax.ShapeDtypeStruct((B_pad, pad_adj), jnp.float32),
                   jax.ShapeDtypeStruct((B_pad, pad_node), jnp.float32)),
        grid=(B_pad // TB,),
        in_specs=in_specs,
        out_specs=(pl.BlockSpec((TB, pad_adj), lambda b: (b, 0)),
                   pl.BlockSpec((TB, pad_node), lambda b: (b, 0))),
        compiler_params=pltpu.CompilerParams(
            dimension_semantics=("parallel",)),
    )(z, bert_out, *flat)

    N = meta["N"]
    adj = adj_p[:B, :N * N].reshape(B, N, N)     # already symmetric (folded)
    node = node_p[:B, :N]
    return adj, node


def make_generator(params, *, N, n_heads):
    """Fold/pad/pack parameters once, return jitted forward(z, bert_out)."""
    flat, meta = _prepare_params(params, N=N, n_heads=n_heads)

    @jax.jit
    def forward(flat_, z, bert_out):
        return _forward(flat_, z, bert_out, meta)

    return functools.partial(forward, flat)


# ----------------------------------------------------------------------------
# Deterministic synthetic parameters (shapes follow the PyTorch __init__).
# Weights are stored in (in, out) layout, i.e. transposed nn.Linear weights.
# ----------------------------------------------------------------------------
def init_params(key, *, z_dim, hid_dims, hid_dims_2, mha_dim, N):
    def lin(k, din, dout, scale=0.1):
        kw, kb = jax.random.split(k)
        return {"w": scale * jax.random.normal(kw, (din, dout), jnp.float32),
                "b": scale * jax.random.normal(kb, (1, dout), jnp.float32)}

    assert hid_dims[-1] == mha_dim, "mode 0 feeds MDL-1 output as the query"
    keys = iter(jax.random.split(key, 32))
    params = {}

    dims1 = [z_dim] + list(hid_dims)
    params["mdl1"] = [lin(next(keys), a, b) for a, b in zip(dims1[:-1], dims1[1:])]

    mh = {}
    for name in ("q", "k", "v", "o"):
        mh["w" + name] = 0.1 * jax.random.normal(next(keys), (mha_dim, mha_dim),
                                                 jnp.float32)
        mh["b" + name] = 0.1 * jax.random.normal(next(keys), (1, mha_dim),
                                                 jnp.float32)
    params["mha"] = mh

    dims2 = [mha_dim] + list(hid_dims_2)
    params["mdl2"] = [lin(next(keys), a, b) for a, b in zip(dims2[:-1], dims2[1:])]

    def head(k, din, hidden, dout):
        k1, k2 = jax.random.split(k)
        l1 = lin(k1, din, hidden)
        l2 = lin(k2, hidden, dout)
        return {"w1": l1["w"], "b1": l1["b"],
                "gamma": jnp.ones((1, hidden), jnp.float32),
                "beta": jnp.zeros((1, hidden), jnp.float32),
                "w2": l2["w"], "b2": l2["b"]}

    params["adj_head"] = head(next(keys), hid_dims_2[-1], 128, N * N)
    params["node_head"] = head(next(keys), hid_dims_2[-1], 64, N)
    return params


# ----------------------------------------------------------------------------
# Pure-JAX reference (same math) for a correctness check.
# ----------------------------------------------------------------------------
def reference_forward(params, z, bert_out, *, N, n_heads):
    def dense_ref(x, l):
        return jnp.maximum(x @ l["w"] + l["b"], 0.0)

    out = z
    for l in params["mdl1"]:
        out = dense_ref(out, l)

    p = params["mha"]
    q = out @ p["wq"] + p["bq"]
    k = jnp.einsum("ble,ef->blf", bert_out, p["wk"]) + p["bk"]
    v = jnp.einsum("ble,ef->blf", bert_out, p["wv"]) + p["bv"]
    B, E = q.shape
    dh = E // n_heads
    qh = q.reshape(B, n_heads, dh)
    kh = k.reshape(B, -1, n_heads, dh)
    vh = v.reshape(B, -1, n_heads, dh)
    s = jnp.einsum("bhd,blhd->bhl", qh, kh) / math.sqrt(dh)
    pw = jax.nn.softmax(s, axis=-1)
    o = jnp.einsum("bhl,blhd->bhd", pw, vh).reshape(B, E)
    out = o @ p["wo"] + p["bo"]

    for l in params["mdl2"]:
        out = dense_ref(out, l)

    def head_ref(x, h):
        y = x @ h["w1"] + h["b1"]
        mu = y.mean(-1, keepdims=True)
        var = jnp.square(y - mu).mean(-1, keepdims=True)
        yn = (y - mu) / jnp.sqrt(var + 1e-5) * h["gamma"] + h["beta"]
        return jnp.maximum(yn, 0.0) @ h["w2"] + h["b2"]

    adj = head_ref(out, params["adj_head"]).reshape(B, N, N)
    adj = 0.5 * (adj + adj.transpose(0, 2, 1))
    node = head_ref(out, params["node_head"])
    return adj, node


if __name__ == "__main__":
    B, z_dim, mha_dim, n_heads, N, L = 2, 16, 32, 4, 8, 8
    hid_dims = [32, mha_dim]      # last hidden dim must equal mha_dim (mode 0)
    hid_dims_2 = [32, 64]

    key = jax.random.PRNGKey(0)
    kp, kz, kb = jax.random.split(key, 3)
    params = init_params(kp, z_dim=z_dim, hid_dims=hid_dims,
                         hid_dims_2=hid_dims_2, mha_dim=mha_dim, N=N)
    z = jax.random.normal(kz, (B, z_dim), jnp.float32)
    bert_out = jax.random.normal(kb, (B, L, mha_dim), jnp.float32)

    forward = make_generator(params, N=N, n_heads=n_heads)
    adj, node = forward(z, bert_out)
    jax.block_until_ready((adj, node))

    adj_ref, node_ref = reference_forward(params, z, bert_out, N=N,
                                          n_heads=n_heads)
    assert adj.shape == (B, N, N) and node.shape == (B, N)
    assert jnp.allclose(adj, adj_ref, atol=1e-4, rtol=1e-4)
    assert jnp.allclose(node, node_ref, atol=1e-4, rtol=1e-4)
    print("KERNEL_OK")
</pallas_src>

<mosaic_0001>
module attributes {stable_mosaic.version = 11 : i64} {
  func.func @_fused_generator_kernel(%arg0: i32, %arg1: memref<8x16xf32, #tpu.memory_space<vmem>>, %arg2: memref<8x8x32xf32, #tpu.memory_space<vmem>>, %arg3: memref<32x8xf32, #tpu.memory_space<vmem>>, %arg4: memref<8x32xf32, #tpu.memory_space<vmem>>, %arg5: memref<24x32xf32, #tpu.memory_space<vmem>>, %arg6: memref<40x32xf32, #tpu.memory_space<vmem>>, %arg7: memref<40x32xf32, #tpu.memory_space<vmem>>, %arg8: memref<40x64xf32, #tpu.memory_space<vmem>>, %arg9: memref<40x32xf32, #tpu.memory_space<vmem>>, %arg10: memref<40x32xf32, #tpu.memory_space<vmem>>, %arg11: memref<40x64xf32, #tpu.memory_space<vmem>>, %arg12: memref<88x128xf32, #tpu.memory_space<vmem>>, %arg13: memref<136x128xf32, #tpu.memory_space<vmem>>, %arg14: memref<88x64xf32, #tpu.memory_space<vmem>>, %arg15: memref<72x128xf32, #tpu.memory_space<vmem>>, %arg16: memref<8x128xf32, #tpu.memory_space<vmem>>, %arg17: memref<8x128xf32, #tpu.memory_space<vmem>>) attributes {dimension_semantics = [#tpu.dimension_semantics<parallel>], iteration_bounds = array<i64: 1>, scalar_prefetch = 0 : i64, scratch_operands = 0 : i64, tpu.core_type = #tpu.core_type<tc>, window_params = [{transform_indices = @transform_0, window_bounds = array<i64: 8, 16>}, {transform_indices = @transform_1, window_bounds = array<i64: 8, 8, 32>}, {pipeline_mode = #tpu.pipeline_mode<synchronous>, transform_indices = @transform_2, window_bounds = array<i64: 32, 8>}, {pipeline_mode = #tpu.pipeline_mode<synchronous>, transform_indices = @transform_3, window_bounds = array<i64: 8, 32>}, {pipeline_mode = #tpu.pipeline_mode<synchronous>, transform_indices = @transform_4, window_bounds = array<i64: 24, 32>}, {pipeline_mode = #tpu.pipeline_mode<synchronous>, transform_indices = @transform_5, window_bounds = array<i64: 40, 32>}, {pipeline_mode = #tpu.pipeline_mode<synchronous>, transform_indices = @transform_6, window_bounds = array<i64: 40, 32>}, {pipeline_mode = #tpu.pipeline_mode<synchronous>, transform_indices = @transform_7, window_bounds = array<i64: 40, 64>}, {pipeline_mode = #tpu.pipeline_mode<synchronous>, transform_indices = @transform_8, window_bounds = array<i64: 40, 32>}, {pipeline_mode = #tpu.pipeline_mode<synchronous>, transform_indices = @transform_9, window_bounds = array<i64: 40, 32>}, {pipeline_mode = #tpu.pipeline_mode<synchronous>, transform_indices = @transform_10, window_bounds = array<i64: 40, 64>}, {pipeline_mode = #tpu.pipeline_mode<synchronous>, transform_indices = @transform_11, window_bounds = array<i64: 88, 128>}, {pipeline_mode = #tpu.pipeline_mode<synchronous>, transform_indices = @transform_12, window_bounds = array<i64: 136, 128>}, {pipeline_mode = #tpu.pipeline_mode<synchronous>, transform_indices = @transform_13, window_bounds = array<i64: 88, 64>}, {pipeline_mode = #tpu.pipeline_mode<synchronous>, transform_indices = @transform_14, window_bounds = array<i64: 72, 128>}, {transform_indices = @transform_15, window_bounds = array<i64: 8, 128>}, {transform_indices = @transform_16, window_bounds = array<i64: 8, 128>}]} {
    %c0 = arith.constant 0 : index
    %c0_0 = arith.constant 0 : index
    %0 = vector.load %arg1[%c0, %c0_0] : memref<8x16xf32, #tpu.memory_space<vmem>>, vector<8x16xf32>
    %c0_1 = arith.constant 0 : index
    %c0_2 = arith.constant 0 : index
    %1 = vector.load %arg5[%c0_1, %c0_2] : memref<24x32xf32, #tpu.memory_space<vmem>>, vector<16x32xf32>
    %cst = arith.constant dense<0.000000e+00> : vector<8x32xf32>
    %2 = tpu.matmul %0, %1, %cst {dimension_numbers = #tpu.dot_dimension_numbers<[1], [0], [0], [1], [0, 0, 1, 1], [], []>} : vector<8x16xf32>, vector<16x32xf32>, vector<8x32xf32> -> vector<8x32xf32>
    %c16 = arith.constant 16 : index
    %c0_3 = arith.constant 0 : index
    %3 = vector.load %arg5[%c16, %c0_3] : memref<24x32xf32, #tpu.memory_space<vmem>>, vector<1x32xf32>
    %4 = vector.broadcast %3 : vector<1x32xf32> to vector<8x32xf32>
    %5 = arith.addf %2, %4 : vector<8x32xf32>
    %cst_4 = arith.constant 0.000000e+00 : f32
    %6 = vector.broadcast %cst_4 : f32 to vector<8x32xf32>
    %7 = arith.maximumf %5, %6 : vector<8x32xf32>
    %c0_5 = arith.constant 0 : index
    %c0_6 = arith.constant 0 : index
    %8 = vector.load %arg6[%c0_5, %c0_6] : memref<40x32xf32, #tpu.memory_space<vmem>>, vector<32x32xf32>
    %cst_7 = arith.constant dense<0.000000e+00> : vector<8x32xf32>
    %9 = tpu.matmul %7, %8, %cst_7 {dimension_numbers = #tpu.dot_dimension_numbers<[1], [0], [0], [1], [0, 0, 1, 1], [], []>} : vector<8x32xf32>, vector<32x32xf32>, vector<8x32xf32> -> vector<8x32xf32>
    %c32 = arith.constant 32 : index
    %c0_8 = arith.constant 0 : index
    %10 = vector.load %arg6[%c32, %c0_8] : memref<40x32xf32, #tpu.memory_space<vmem>>, vector<1x32xf32>
    %11 = vector.broadcast %10 : vector<1x32xf32> to vector<8x32xf32>
    %12 = arith.addf %9, %11 : vector<8x32xf32>
    %cst_9 = arith.constant 0.000000e+00 : f32
    %13 = vector.broadcast %cst_9 : f32 to vector<8x32xf32>
    %14 = arith.maximumf %12, %13 : vector<8x32xf32>
    %c0_10 = arith.constant 0 : index
    %c0_11 = arith.constant 0 : index
    %c0_12 = arith.constant 0 : index
    %15 = vector.load %arg2[%c0_10, %c0_11, %c0_12] : memref<8x8x32xf32, #tpu.memory_space<vmem>>, vector<8x8x32xf32>
    %c0_13 = arith.constant 0 : index
    %c0_14 = arith.constant 0 : index
    %16 = vector.load %arg7[%c0_13, %c0_14] : memref<40x32xf32, #tpu.memory_space<vmem>>, vector<32x32xf32>
    %cst_15 = arith.constant dense<0.000000e+00> : vector<8x32xf32>
    %17 = tpu.matmul %14, %16, %cst_15 {dimension_numbers = #tpu.dot_dimension_numbers<[1], [0], [0], [1], [0, 0, 1, 1], [], []>} : vector<8x32xf32>, vector<32x32xf32>, vector<8x32xf32> -> vector<8x32xf32>
    %c32_16 = arith.constant 32 : index
    %c0_17 = arith.constant 0 : index
    %18 = vector.load %arg7[%c32_16, %c0_17] : memref<40x32xf32, #tpu.memory_space<vmem>>, vector<1x32xf32>
    %19 = vector.broadcast %18 : vector<1x32xf32> to vector<8x32xf32>
    %20 = arith.addf %17, %19 : vector<8x32xf32>
    %21 = vector.shape_cast %15 : vector<8x8x32xf32> to vector<64x32xf32>
    %c0_18 = arith.constant 0 : index
    %c0_19 = arith.constant 0 : index
    %22 = vector.load %arg8[%c0_18, %c0_19] : memref<40x64xf32, #tpu.memory_space<vmem>>, vector<32x64xf32>
    %cst_20 = arith.constant dense<0.000000e+00> : vector<64x64xf32>
    %23 = tpu.matmul %21, %22, %cst_20 {dimension_numbers = #tpu.dot_dimension_numbers<[1], [0], [0], [1], [0, 0, 1, 1], [], []>} : vector<64x32xf32>, vector<32x64xf32>, vector<64x64xf32> -> vector<64x64xf32>
    %c32_21 = arith.constant 32 : index
    %c0_22 = arith.constant 0 : index
    %24 = vector.load %arg8[%c32_21, %c0_22] : memref<40x64xf32, #tpu.memory_space<vmem>>, vector<1x64xf32>
    %25 = vector.broadcast %24 : vector<1x64xf32> to vector<64x64xf32>
    %26 = arith.addf %23, %25 : vector<64x64xf32>
    %27 = vector.extract_strided_slice %26 {offsets = [0, 0], sizes = [64, 32], strides = [1, 1]} : vector<64x64xf32> to vector<64x32xf32>
    %28 = vector.extract_strided_slice %26 {offsets = [0, 32], sizes = [64, 32], strides = [1, 1]} : vector<64x64xf32> to vector<64x32xf32>
    %29 = vector.shape_cast %27 : vector<64x32xf32> to vector<8x8x32xf32>
    %30 = vector.shape_cast %20 : vector<8x32xf32> to vector<8x1x32xf32>
    %31 = vector.broadcast %30 : vector<8x1x32xf32> to vector<8x8x32xf32>
    %32 = arith.mulf %29, %31 : vector<8x8x32xf32>
    %33 = vector.shape_cast %32 : vector<8x8x32xf32> to vector<64x32xf32>
    %c0_23 = arith.constant 0 : index
    %c0_24 = arith.constant 0 : index
    %34 = vector.load %arg3[%c0_23, %c0_24] : memref<32x8xf32, #tpu.memory_space<vmem>>, vector<32x8xf32>
    %cst_25 = arith.constant dense<0.000000e+00> : vector<64x8xf32>
    %35 = tpu.matmul %33, %34, %cst_25 {dimension_numbers = #tpu.dot_dimension_numbers<[1], [0], [0], [1], [0, 0, 1, 1], [], []>} : vector<64x32xf32>, vector<32x8xf32>, vector<64x8xf32> -> vector<64x8xf32>
    %36 = vector.shape_cast %35 : vector<64x8xf32> to vector<8x8x8xf32>
    %cst_26 = arith.constant dense<0xFF800000> : vector<8x8xf32>
    %37 = vector.multi_reduction <maximumf>, %36, %cst_26 [1] : vector<8x8x8xf32> to vector<8x8xf32>
    %38 = vector.shape_cast %37 : vector<8x8xf32> to vector<8x1x8xf32>
    %39 = vector.broadcast %38 : vector<8x1x8xf32> to vector<8x8x8xf32>
    %40 = arith.subf %36, %39 : vector<8x8x8xf32>
    %41 = math.exp %40 : vector<8x8x8xf32>
    %cst_27 = arith.constant dense<0.000000e+00> : vector<8x8xf32>
    %42 = vector.multi_reduction <add>, %41, %cst_27 [1] : vector<8x8x8xf32> to vector<8x8xf32>
    %43 = vector.shape_cast %42 : vector<8x8xf32> to vector<8x1x8xf32>
    %44 = vector.broadcast %43 : vector<8x1x8xf32> to vector<8x8x8xf32>
    %45 = arith.divf %41, %44 : vector<8x8x8xf32>
    %46 = vector.shape_cast %45 : vector<8x8x8xf32> to vector<64x8xf32>
    %c0_28 = arith.constant 0 : index
    %c0_29 = arith.constant 0 : index
    %47 = vector.load %arg4[%c0_28, %c0_29] : memref<8x32xf32, #tpu.memory_space<vmem>>, vector<8x32xf32>
    %cst_30 = arith.constant dense<0.000000e+00> : vector<64x32xf32>
    %48 = tpu.matmul %46, %47, %cst_30 {dimension_numbers = #tpu.dot_dimension_numbers<[1], [0], [0], [1], [0, 0, 1, 1], [], []>} : vector<64x8xf32>, vector<8x32xf32>, vector<64x32xf32> -> vector<64x32xf32>
    %49 = vector.shape_cast %48 : vector<64x32xf32> to vector<8x8x32xf32>
    %50 = vector.shape_cast %28 : vector<64x32xf32> to vector<8x8x32xf32>
    %51 = arith.mulf %49, %50 : vector<8x8x32xf32>
    %cst_31 = arith.constant dense<0.000000e+00> : vector<8x32xf32>
    %52 = vector.multi_reduction <add>, %51, %cst_31 [1] : vector<8x8x32xf32> to vector<8x32xf32>
    %c0_32 = arith.constant 0 : index
    %c0_33 = arith.constant 0 : index
    %53 = vector.load %arg9[%c0_32, %c0_33] : memref<40x32xf32, #tpu.memory_space<vmem>>, vector<32x32xf32>
    %cst_34 = arith.constant dense<0.000000e+00> : vector<8x32xf32>
    %54 = tpu.matmul %52, %53, %cst_34 {dimension_numbers = #tpu.dot_dimension_numbers<[1], [0], [0], [1], [0, 0, 1, 1], [], []>} : vector<8x32xf32>, vector<32x32xf32>, vector<8x32xf32> -> vector<8x32xf32>
    %c32_35 = arith.constant 32 : index
    %c0_36 = arith.constant 0 : index
    %55 = vector.load %arg9[%c32_35, %c0_36] : memref<40x32xf32, #tpu.memory_space<vmem>>, vector<1x32xf32>
    %56 = vector.broadcast %55 : vector<1x32xf32> to vector<8x32xf32>
    %57 = arith.addf %54, %56 : vector<8x32xf32>
    %c0_37 = arith.constant 0 : index
    %c0_38 = arith.constant 0 : index
    %58 = vector.load %arg10[%c0_37, %c0_38] : memref<40x32xf32, #tpu.memory_space<vmem>>, vector<32x32xf32>
    %cst_39 = arith.constant dense<0.000000e+00> : vector<8x32xf32>
    %59 = tpu.matmul %57, %58, %cst_39 {dimension_numbers = #tpu.dot_dimension_numbers<[1], [0], [0], [1], [0, 0, 1, 1], [], []>} : vector<8x32xf32>, vector<32x32xf32>, vector<8x32xf32> -> vector<8x32xf32>
    %c32_40 = arith.constant 32 : index
    %c0_41 = arith.constant 0 : index
    %60 = vector.load %arg10[%c32_40, %c0_41] : memref<40x32xf32, #tpu.memory_space<vmem>>, vector<1x32xf32>
    %61 = vector.broadcast %60 : vector<1x32xf32> to vector<8x32xf32>
    %62 = arith.addf %59, %61 : vector<8x32xf32>
    %cst_42 = arith.constant 0.000000e+00 : f32
    %63 = vector.broadcast %cst_42 : f32 to vector<8x32xf32>
    %64 = arith.maximumf %62, %63 : vector<8x32xf32>
    %c0_43 = arith.constant 0 : index
    %c0_44 = arith.constant 0 : index
    %65 = vector.load %arg11[%c0_43, %c0_44] : memref<40x64xf32, #tpu.memory_space<vmem>>, vector<32x64xf32>
    %cst_45 = arith.constant dense<0.000000e+00> : vector<8x64xf32>
    %66 = tpu.matmul %64, %65, %cst_45 {dimension_numbers = #tpu.dot_dimension_numbers<[1], [0], [0], [1], [0, 0, 1, 1], [], []>} : vector<8x32xf32>, vector<32x64xf32>, vector<8x64xf32> -> vector<8x64xf32>
    %c32_46 = arith.constant 32 : index
    %c0_47 = arith.constant 0 : index
    %67 = vector.load %arg11[%c32_46, %c0_47] : memref<40x64xf32, #tpu.memory_space<vmem>>, vector<1x64xf32>
    %68 = vector.broadcast %67 : vector<1x64xf32> to vector<8x64xf32>
    %69 = arith.addf %66, %68 : vector<8x64xf32>
    %cst_48 = arith.constant 0.000000e+00 : f32
    %70 = vector.broadcast %cst_48 : f32 to vector<8x64xf32>
    %71 = arith.maximumf %69, %70 : vector<8x64xf32>
    %c0_49 = arith.constant 0 : index
    %c0_50 = arith.constant 0 : index
    %72 = vector.load %arg12[%c0_49, %c0_50] : memref<88x128xf32, #tpu.memory_space<vmem>>, vector<64x128xf32>
    %cst_51 = arith.constant dense<0.000000e+00> : vector<8x128xf32>
    %73 = tpu.matmul %71, %72, %cst_51 {dimension_numbers = #tpu.dot_dimension_numbers<[1], [0], [0], [1], [0, 0, 1, 1], [], []>} : vector<8x64xf32>, vector<64x128xf32>, vector<8x128xf32> -> vector<8x128xf32>
    %c64 = arith.constant 64 : index
    %c0_52 = arith.constant 0 : index
    %74 = vector.load %arg12[%c64, %c0_52] : memref<88x128xf32, #tpu.memory_space<vmem>>, vector<1x128xf32>
    %75 = vector.broadcast %74 : vector<1x128xf32> to vector<8x128xf32>
    %76 = arith.addf %73, %75 : vector<8x128xf32>
    %c72 = arith.constant 72 : index
    %c0_53 = arith.constant 0 : index
    %77 = vector.load %arg12[%c72, %c0_53] : memref<88x128xf32, #tpu.memory_space<vmem>>, vector<1x128xf32>
    %c80 = arith.constant 80 : index
    %c0_54 = arith.constant 0 : index
    %78 = vector.load %arg12[%c80, %c0_54] : memref<88x128xf32, #tpu.memory_space<vmem>>, vector<1x128xf32>
    %cst_55 = arith.constant dense<0.000000e+00> : vector<8xf32>
    %79 = vector.multi_reduction <add>, %76, %cst_55 [1] : vector<8x128xf32> to vector<8xf32>
    %80 = vector.shape_cast %79 : vector<8xf32> to vector<8x1xf32>
    %cst_56 = arith.constant 1.280000e+02 : f32
    %81 = vector.broadcast %cst_56 : f32 to vector<8x1xf32>
    %82 = arith.divf %80, %81 : vector<8x1xf32>
    %83 = vector.broadcast %82 : vector<8x1xf32> to vector<8x128xf32>
    %84 = arith.subf %76, %83 : vector<8x128xf32>
    %85 = arith.mulf %84, %84 : vector<8x128xf32>
    %cst_57 = arith.constant dense<0.000000e+00> : vector<8xf32>
    %86 = vector.multi_reduction <add>, %85, %cst_57 [1] : vector<8x128xf32> to vector<8xf32>
    %87 = vector.shape_cast %86 : vector<8xf32> to vector<8x1xf32>
    %cst_58 = arith.constant 1.280000e+02 : f32
    %88 = vector.broadcast %cst_58 : f32 to vector<8x1xf32>
    %89 = arith.divf %87, %88 : vector<8x1xf32>
    %90 = vector.broadcast %82 : vector<8x1xf32> to vector<8x128xf32>
    %91 = arith.subf %76, %90 : vector<8x128xf32>
    %cst_59 = arith.constant 9.99999974E-6 : f32
    %92 = vector.broadcast %cst_59 : f32 to vector<8x1xf32>
    %93 = arith.addf %89, %92 : vector<8x1xf32>
    %94 = math.rsqrt %93 : vector<8x1xf32>
    %95 = vector.broadcast %94 : vector<8x1xf32> to vector<8x128xf32>
    %96 = arith.mulf %91, %95 : vector<8x128xf32>
    %97 = vector.broadcast %77 : vector<1x128xf32> to vector<8x128xf32>
    %98 = arith.mulf %96, %97 : vector<8x128xf32>
    %99 = vector.broadcast %78 : vector<1x128xf32> to vector<8x128xf32>
    %100 = arith.addf %98, %99 : vector<8x128xf32>
    %cst_60 = arith.constant 0.000000e+00 : f32
    %101 = vector.broadcast %cst_60 : f32 to vector<8x128xf32>
    %102 = arith.maximumf %100, %101 : vector<8x128xf32>
    %c0_61 = arith.constant 0 : index
    %c0_62 = arith.constant 0 : index
    %103 = vector.load %arg13[%c0_61, %c0_62] : memref<136x128xf32, #tpu.memory_space<vmem>>, vector<128x128xf32>
    %cst_63 = arith.constant dense<0.000000e+00> : vector<8x128xf32>
    %104 = tpu.matmul %102, %103, %cst_63 {dimension_numbers = #tpu.dot_dimension_numbers<[1], [0], [0], [1], [0, 0, 1, 1], [], []>} : vector<8x128xf32>, vector<128x128xf32>, vector<8x128xf32> -> vector<8x128xf32>
    %c128 = arith.constant 128 : index
    %c0_64 = arith.constant 0 : index
    %105 = vector.load %arg13[%c128, %c0_64] : memref<136x128xf32, #tpu.memory_space<vmem>>, vector<1x128xf32>
    %106 = vector.broadcast %105 : vector<1x128xf32> to vector<8x128xf32>
    %107 = arith.addf %104, %106 : vector<8x128xf32>
    %c0_65 = arith.constant 0 : index
    %c0_66 = arith.constant 0 : index
    %108 = vector.load %arg16[%c0_65, %c0_66] : memref<8x128xf32, #tpu.memory_space<vmem>>, vector<8x128xf32>
    tpu.vector_store %arg16[%c0_65, %c0_66], %107 {strides = array<i32>} : memref<8x128xf32, #tpu.memory_space<vmem>>, vector<8x128xf32>,
    %c0_67 = arith.constant 0 : index
    %c0_68 = arith.constant 0 : index
    %109 = vector.load %arg14[%c0_67, %c0_68] : memref<88x64xf32, #tpu.memory_space<vmem>>, vector<64x64xf32>
    %cst_69 = arith.constant dense<0.000000e+00> : vector<8x64xf32>
    %110 = tpu.matmul %71, %109, %cst_69 {dimension_numbers = #tpu.dot_dimension_numbers<[1], [0], [0], [1], [0, 0, 1, 1], [], []>} : vector<8x64xf32>, vector<64x64xf32>, vector<8x64xf32> -> vector<8x64xf32>
    %c64_70 = arith.constant 64 : index
    %c0_71 = arith.constant 0 : index
    %111 = vector.load %arg14[%c64_70, %c0_71] : memref<88x64xf32, #tpu.memory_space<vmem>>, vector<1x64xf32>
    %112 = vector.broadcast %111 : vector<1x64xf32> to vector<8x64xf32>
    %113 = arith.addf %110, %112 : vector<8x64xf32>
    %c72_72 = arith.constant 72 : index
    %c0_73 = arith.constant 0 : index
    %114 = vector.load %arg14[%c72_72, %c0_73] : memref<88x64xf32, #tpu.memory_space<vmem>>, vector<1x64xf32>
    %c80_74 = arith.constant 80 : index
    %c0_75 = arith.constant 0 : index
    %115 = vector.load %arg14[%c80_74, %c0_75] : memref<88x64xf32, #tpu.memory_space<vmem>>, vector<1x64xf32>
    %cst_76 = arith.constant dense<0.000000e+00> : vector<8xf32>
    %116 = vector.multi_reduction <add>, %113, %cst_76 [1] : vector<8x64xf32> to vector<8xf32>
    %117 = vector.shape_cast %116 : vector<8xf32> to vector<8x1xf32>
    %cst_77 = arith.constant 6.400000e+01 : f32
    %118 = vector.broadcast %cst_77 : f32 to vector<8x1xf32>
    %119 = arith.divf %117, %118 : vector<8x1xf32>
    %120 = vector.broadcast %119 : vector<8x1xf32> to vector<8x64xf32>
    %121 = arith.subf %113, %120 : vector<8x64xf32>
    %122 = arith.mulf %121, %121 : vector<8x64xf32>
    %cst_78 = arith.constant dense<0.000000e+00> : vector<8xf32>
    %123 = vector.multi_reduction <add>, %122, %cst_78 [1] : vector<8x64xf32> to vector<8xf32>
    %124 = vector.shape_cast %123 : vector<8xf32> to vector<8x1xf32>
    %cst_79 = arith.constant 6.400000e+01 : f32
    %125 = vector.broadcast %cst_79 : f32 to vector<8x1xf32>
    %126 = arith.divf %124, %125 : vector<8x1xf32>
    %127 = vector.broadcast %119 : vector<8x1xf32> to vector<8x64xf32>
    %128 = arith.subf %113, %127 : vector<8x64xf32>
    %cst_80 = arith.constant 9.99999974E-6 : f32
    %129 = vector.broadcast %cst_80 : f32 to vector<8x1xf32>
    %130 = arith.addf %126, %129 : vector<8x1xf32>
    %131 = math.rsqrt %130 : vector<8x1xf32>
    %132 = vector.broadcast %131 : vector<8x1xf32> to vector<8x64xf32>
    %133 = arith.mulf %128, %132 : vector<8x64xf32>
    %134 = vector.broadcast %114 : vector<1x64xf32> to vector<8x64xf32>
    %135 = arith.mulf %133, %134 : vector<8x64xf32>
    %136 = vector.broadcast %115 : vector<1x64xf32> to vector<8x64xf32>
    %137 = arith.addf %135, %136 : vector<8x64xf32>
    %cst_81 = arith.constant 0.000000e+00 : f32
    %138 = vector.broadcast %cst_81 : f32 to vector<8x64xf32>
    %139 = arith.maximumf %137, %138 : vector<8x64xf32>
    %c0_82 = arith.constant 0 : index
    %c0_83 = arith.constant 0 : index
    %140 = vector.load %arg15[%c0_82, %c0_83] : memref<72x128xf32, #tpu.memory_space<vmem>>, vector<64x128xf32>
    %cst_84 = arith.constant dense<0.000000e+00> : vector<8x128xf32>
    %141 = tpu.matmul %139, %140, %cst_84 {dimension_numbers = #tpu.dot_dimension_numbers<[1], [0], [0], [1], [0, 0, 1, 1], [], []>} : vector<8x64xf32>, vector<64x128xf32>, vector<8x128xf32> -> vector<8x128xf32>
    %c64_85 = arith.constant 64 : index
    %c0_86 = arith.constant 0 : index
    %142 = vector.load %arg15[%c64_85, %c0_86] : memref<72x128xf32, #tpu.memory_space<vmem>>, vector<1x128xf32>
    %143 = vector.broadcast %142 : vector<1x128xf32> to vector<8x128xf32>
    %144 = arith.addf %141, %143 : vector<8x128xf32>
    %c0_87 = arith.constant 0 : index
    %c0_88 = arith.constant 0 : index
    %145 = vector.load %arg17[%c0_87, %c0_88] : memref<8x128xf32, #tpu.memory_space<vmem>>, vector<8x128xf32>
    tpu.vector_store %arg17[%c0_87, %c0_88], %144 {strides = array<i32>} : memref<8x128xf32, #tpu.memory_space<vmem>>, vector<8x128xf32>,
    return
  }
  func.func @transform_0(%arg0: i32) -> (i32, i32) {
    %c0_i32 = arith.constant 0 : i32
    %c0_i32_0 = arith.constant 0 : i32
    return %arg0, %c0_i32 : i32, i32
  }
  func.func @transform_1(%arg0: i32) -> (i32, i32, i32) {
    %c0_i32 = arith.constant 0 : i32
    %c0_i32_0 = arith.constant 0 : i32
    %c0_i32_1 = arith.constant 0 : i32
    return %arg0, %c0_i32, %c0_i32_0 : i32, i32, i32
  }
  func.func @transform_2(%arg0: i32) -> (i32, i32) {
    %c0_i32 = arith.constant 0 : i32
    %c0_i32_0 = arith.constant 0 : i32
    %c0_i32_1 = arith.constant 0 : i32
    return %c0_i32, %c0_i32_0 : i32, i32
  }
  func.func @transform_3(%arg0: i32) -> (i32, i32) {
    %c0_i32 = arith.constant 0 : i32
    %c0_i32_0 = arith.constant 0 : i32
    %c0_i32_1 = arith.constant 0 : i32
    return %c0_i32, %c0_i32_0 : i32, i32
  }
  func.func @transform_4(%arg0: i32) -> (i32, i32) {
    %c0_i32 = arith.constant 0 : i32
    %c0_i32_0 = arith.constant 0 : i32
    %c0_i32_1 = arith.constant 0 : i32
    return %c0_i32, %c0_i32_0 : i32, i32
  }
  func.func @transform_5(%arg0: i32) -> (i32, i32) {
    %c0_i32 = arith.constant 0 : i32
    %c0_i32_0 = arith.constant 0 : i32
    %c0_i32_1 = arith.constant 0 : i32
    return %c0_i32, %c0_i32_0 : i32, i32
  }
  func.func @transform_6(%arg0: i32) -> (i32, i32) {
    %c0_i32 = arith.constant 0 : i32
    %c0_i32_0 = arith.constant 0 : i32
    %c0_i32_1 = arith.constant 0 : i32
    return %c0_i32, %c0_i32_0 : i32, i32
  }
  func.func @transform_7(%arg0: i32) -> (i32, i32) {
    %c0_i32 = arith.constant 0 : i32
    %c0_i32_0 = arith.constant 0 : i32
    %c0_i32_1 = arith.constant 0 : i32
    return %c0_i32, %c0_i32_0 : i32, i32
  }
  func.func @transform_8(%arg0: i32) -> (i32, i32) {
    %c0_i32 = arith.constant 0 : i32
    %c0_i32_0 = arith.constant 0 : i32
    %c0_i32_1 = arith.constant 0 : i32
    return %c0_i32, %c0_i32_0 : i32, i32
  }
  func.func @transform_9(%arg0: i32) -> (i32, i32) {
    %c0_i32 = arith.constant 0 : i32
    %c0_i32_0 = arith.constant 0 : i32
    %c0_i32_1 = arith.constant 0 : i32
    return %c0_i32, %c0_i32_0 : i32, i32
  }
  func.func @transform_10(%arg0: i32) -> (i32, i32) {
    %c0_i32 = arith.constant 0 : i32
    %c0_i32_0 = arith.constant 0 : i32
    %c0_i32_1 = arith.constant 0 : i32
    return %c0_i32, %c0_i32_0 : i32, i32
  }
  func.func @transform_11(%arg0: i32) -> (i32, i32) {
    %c0_i32 = arith.constant 0 : i32
    %c0_i32_0 = arith.constant 0 : i32
    %c0_i32_1 = arith.constant 0 : i32
    return %c0_i32, %c0_i32_0 : i32, i32
  }
  func.func @transform_12(%arg0: i32) -> (i32, i32) {
    %c0_i32 = arith.constant 0 : i32
    %c0_i32_0 = arith.constant 0 : i32
    %c0_i32_1 = arith.constant 0 : i32
    return %c0_i32, %c0_i32_0 : i32, i32
  }
  func.func @transform_13(%arg0: i32) -> (i32, i32) {
    %c0_i32 = arith.constant 0 : i32
    %c0_i32_0 = arith.constant 0 : i32
    %c0_i32_1 = arith.constant 0 : i32
    return %c0_i32, %c0_i32_0 : i32, i32
  }
  func.func @transform_14(%arg0: i32) -> (i32, i32) {
    %c0_i32 = arith.constant 0 : i32
    %c0_i32_0 = arith.constant 0 : i32
    %c0_i32_1 = arith.constant 0 : i32
    return %c0_i32, %c0_i32_0 : i32, i32
  }
  func.func @transform_15(%arg0: i32) -> (i32, i32) {
    %c0_i32 = arith.constant 0 : i32
    %c0_i32_0 = arith.constant 0 : i32
    return %arg0, %c0_i32 : i32, i32
  }
  func.func @transform_16(%arg0: i32) -> (i32, i32) {
    %c0_i32 = arith.constant 0 : i32
    %c0_i32_0 = arith.constant 0 : i32
    return %arg0, %c0_i32 : i32, i32
  }
}

</mosaic_0001>

<bundles_post_ra>
// kernel: forward.1
= control target key start
LH: loop header
LB: loop body
LE: loop exit
PB: predicated region body
PF: predicated region fallthrough
CT: control target
= control target key end

     0   :  { %s1742_s0 = inlined_call_operand.vmem [shape: f32[8,16], index: 0, kind: input, shape index: {}]   ;;  %s1743_s1 = inlined_call_operand.vmem [shape: f32[8,8,32], index: 1, kind: input, shape index: {}]   ;;  %s1744_s2 = inlined_call_operand.vmem [shape: f32[32,8], index: 2, kind: input, shape index: {}]   ;;  %s1745_s3 = inlined_call_operand.hbm [shape: f32[8,32], index: 3, kind: input, shape index: {}]   ;;  %s1746_s4 = inlined_call_operand.vmem [shape: f32[24,32], index: 4, kind: input, shape index: {}]   ;;  %s1747_s5 = inlined_call_operand.vmem [shape: f32[40,32], index: 5, kind: input, shape index: {}]   ;;  %s1748_s6 = inlined_call_operand.vmem [shape: f32[40,32], index: 6, kind: input, shape index: {}]   ;;  %s1749_s7 = inlined_call_operand.vmem [shape: f32[40,64], index: 7, kind: input, shape index: {}]   ;;  %s1750_s8 = inlined_call_operand.vmem [shape: f32[40,32], index: 8, kind: input, shape index: {}]   ;;  %s1751_s9 = inlined_call_operand.vmem [shape: f32[40,32], index: 9, kind: input, shape index: {}]   ;;  %s1752_s10 = inlined_call_operand.hbm [shape: f32[40,64], index: 10, kind: input, shape index: {}]   ;;  %s1753_s11 = inlined_call_operand.vmem [shape: f32[88,128], index: 11, kind: input, shape index: {}]   ;;  %s1754_s12 = inlined_call_operand.vmem [shape: f32[136,128], index: 12, kind: input, shape index: {}]   ;;  %s1755_s13 = inlined_call_operand.vmem [shape: f32[88,64], index: 13, kind: input, shape index: {}]   ;;  %s1756_s14 = inlined_call_operand.vmem [shape: f32[72,128], index: 14, kind: input, shape index: {}]   ;;  %s1757_s15 = inlined_call_operand.vmem [shape: f32[8,128], index: 15, kind: output, shape index: {0}]   ;;  %s1758_s16 = inlined_call_operand.vmem [shape: f32[8,128], index: 16, kind: output, shape index: {1}]  }
   0x1   :  { %1759 = sst [smem:[#allocation8_spill]] %s1742_s0 }
   0x2   :  { %22 = vsyncpa [#allocation3], 0  ;;  %s35_s23 = sshll.u32 %s1745_s3, 4  ;;  %s36_s23 = int_to_ptr.hbm [resolvable:$true] %s35_s23 }
   0x3   :  { %23 = vsyncpa [#allocation5], 0  ;;  %s1245_s24 = smov [#allocation2]   ;;  %s57_s28 = sshll.u32 %s1752_s10, 4  ;;  %s58_s28 = int_to_ptr.hbm [resolvable:$true] %s57_s28 }
   0x4   :  { %s37_s25 = sshll.u32 %s1245_s24, 4  ;;  %s1246_s29 = smov [#allocation4]   ;;  %s38_s25 = int_to_ptr.vmem [resolvable:$true] %s37_s25 }
   0x5   :  { %40 = dma.hbm_to_vmem [thread:$0]  %s36_s23, 128, %s38_s25, [#allocation3]  }
   0x6   :  { %s59_s30 = sshll.u32 %s1246_s29, 4  ;;  %s1247_s0 = smov 128   ;;  %s60_s30 = int_to_ptr.vmem [resolvable:$true] %s59_s30 }
   0x7   :  { %s1248_s17 = smov 8  }
   0x8   :  { %65 = dma.hbm_to_vmem [thread:$0]  %s58_s28, 640, %s60_s30, [#allocation5], %s1247_s0, %s1247_s0, %s1248_s17  }
   0x9   :  { %1241 = dma.done.wait [#allocation3], 128  }
   0xa   :  { %1242 = vsyncadd [#allocation3], 4294967168 }
   0xb   :  { %1243 = dma.done.wait [#allocation5], 640  }
   0xc   :  { %1244 = vsyncadd [#allocation5], 4294966656  ;;  %v84_v0 = vld [vmem:[%s1746_s4 + $0x8] sm:$0xff]  ;;  %v83_v1 = vld [vmem:[%s1746_s4] sm:$0xff]  ;;  %s1760_s22 = sld [smem:[#allocation8_spill]]  ;;  %vm87_vm0 = vcmask 130048  }
   0xd   :  { %105 = vmatpush.msra.mxu2 %v84_v0  ;;  %v115_v3 = vld [vmem:[%s1747_s5 + $0x18] sm:$0xff]  ;;  %v114_v4 = vld [vmem:[%s1747_s5 + $0x10] sm:$0xff]  ;;  %v113_v5 = vld [vmem:[%s1747_s5 + $0x8] sm:$0xff]  ;;  %vm118_vm1 = vcmask 261120   ;;  %vm352_vm2 = vcmask 64512  }
   0xe   :  { %134 = vmatpush.msra.mxu1 %v115_v3  ;;  %v112_v6 = vld [vmem:[%s1747_s5] sm:$0xff]  ;;  %v183_v7 = vld [vmem:[%s1749_s7 + $0x18] sm:$0xff]  ;;  %v182_v8 = vld [vmem:[%s1749_s7 + $0x10] sm:$0xff] }
   0xf   :  { %106 = vmatpush.msra.mxu2 %v83_v1  ;;  %222 = vmatpush.msra.mxu3 %v183_v7  ;;  %v181_v9 = vld [vmem:[%s1749_s7 + $0x8] sm:$0xff]  ;;  %v180_v10 = vld [vmem:[%s1749_s7] sm:$0xff]  ;;  %v154_v13 = vld [vmem:[%s1748_s6 + $0x18] sm:$0xff] }
  0x10   :  { %135 = vmatpush.msra.mxu1 %v114_v4  ;;  %v143_v11 = vld [vmem:[%s1743_s1] sm:$0xff]  ;;  %v144_v12 = vld [vmem:[%s1743_s1 + $0x8] sm:$0xff]  ;;  %v153_v14 = vld [vmem:[%s1748_s6 + $0x10] sm:$0xff] }
  0x11   :  { %223 = vmatpush.msra.mxu3 %v182_v8  ;;  %172 = vmatpush.msrb.mxu2 %v154_v13  ;;  %v145_v15 = vld [vmem:[%s1743_s1 + $0x10] sm:$0xff]  ;;  %v146_v19 = vld [vmem:[%s1743_s1 + $0x18] sm:$0xff]  ;;  %v147_v21 = vld [vmem:[%s1743_s1 + $0x20] sm:$0xff] }
  0x12   :  { %v82_v2 = vld [vmem:[%s1760_s22] sm:$0xff]  ;;  %136 = vmatpush.msra.mxu1 %v113_v5  ;;  %v1138_v16 = vld [vmem:[%s1746_s4 + $0x10] ss:$0 sm:$0xff]  ;;  %v148_v22 = vld [vmem:[%s1743_s1 + $0x28] sm:$0xff] }
  0x13   :  { %1098 = vmatmul.msk.f32.vlgmr.msra.gmra.mxu2 %vm87_vm0, %v82_v2  ;;  %224 = vmatpush.msra.mxu3 %v181_v9  ;;  %v149_v23 = vld [vmem:[%s1743_s1 + $0x30] sm:$0xff]  ;;  %v152_v24 = vld [vmem:[%s1748_s6 + $0x8] sm:$0xff]  ;;  %v151_v25 = vld [vmem:[%s1748_s6] sm:$0xff] }
  0x14   :  { %137 = vmatpush.msra.mxu1 %v112_v6  ;;  %173 = vmatpush.msrb.mxu2 %v153_v14  ;;  %v150_v26 = vld [vmem:[%s1743_s1 + $0x38] sm:$0xff]  ;;  %v1139_v29 = vld [vmem:[%s1747_s5 + $0x20] ss:$0 sm:$0xff]  ;;  %s1249_s1 = smov 96   ;;  %v285_v47 = vld [vmem:[%s1744_s2 + $0x10] sm:$0xff] }
  0x15   :  { %225 = vmatpush.msra.mxu3 %v180_v10  ;;  %v1140_v34 = vld [vmem:[%s1749_s7 + $0x20] ss:$0 sm:$0xff]  ;;  %v286_v46 = vld [vmem:[%s1744_s2 + $0x18] sm:$0xff]  ;;  %v284_v48 = vld [vmem:[%s1744_s2 + $0x8] sm:$0xff] }
  0x16   :  { %1101 = vmatmul.msk.f32.vlgmr.msra.gmra.mxu3 %vm118_vm1, %v143_v11  ;;  %174 = vmatpush.msrb.mxu2 %v152_v24  ;;  %v283_v51 = vld [vmem:[%s1744_s2] sm:$0xff] }
  0x17   :  { %323 = vmatpush.msra.mxu0 %v286_v46  ;;  %v1141_v52 = vld [vmem:[%s1748_s6 + $0x20] ss:$0 sm:$0xff] }
  0x18   :  { %175 = vmatpush.msrb.mxu2 %v151_v25 }
  0x19   :  { %324 = vmatpush.msra.mxu0 %v285_v47 }
  0x1b   :  { %325 = vmatpush.msra.mxu0 %v284_v48 }
  0x1d   :  { %326 = vmatpush.msra.mxu0 %v283_v51 }
  0x1e   :  { %1102 = vmatmul.msk.f32.gmra.mxu3 %vm118_vm1, %v144_v12 }
  0x26   :  { %1103 = vmatmul.msk.f32.gmra.mxu3 %vm118_vm1, %v145_v15 }
  0x2e   :  { %1104 = vmatmul.msk.f32.gmra.mxu3 %vm118_vm1, %v146_v19 }
  0x36   :  { %1105 = vmatmul.msk.f32.gmra.mxu3 %vm118_vm1, %v147_v21 }
  0x3e   :  { %1106 = vmatmul.msk.f32.gmra.mxu3 %vm118_vm1, %v148_v22 }
  0x46   :  { %1107 = vmatmul.msk.f32.gmra.mxu3 %vm118_vm1, %v149_v23 }
  0x4e   :  { %1108 = vmatmul.msk.f32.gmra.mxu3 %vm118_vm1, %v150_v26 }
  0x96   :  { %v108_v17 = vpop.f32.mrf.mxu2 }
  0x97   :  { %v109_v18 = vadd.f32 %v1138_v16, %v108_v17 }
  0x99   :  { %v111_v20 = vmax.f32 %v109_v18, 0.0  ;;  %v227_v27 = vpop.f32.mrf.mxu3 }
  0x9a   :  { %v228_v36 = vadd.f32 %v1140_v34, %v227_v27 }
  0x9b   :  { %1099 = vmatmul.msk.f32.vlgmr.msra.gmra.mxu1 %vm118_vm1, %v111_v20 }
  0x9c   :  { %683 = vrot.lane.b32.xlu0 %v228_v36, %s1249_s1 }
  0xa1   :  { %v230_v28 = vpop.f32.mrf.mxu3 }
  0xa2   :  { %v231_v40 = vadd.f32 %v1140_v34, %v230_v28 }
  0xa4   :  { %685 = vrot.lane.b32.xlu0 %v231_v40, %s1249_s1 }
  0xa9   :  { %v233_v30 = vpop.f32.mrf.mxu3 }
  0xaa   :  { %v234_v37 = vadd.f32 %v1140_v34, %v233_v30 }
  0xac   :  { %687 = vrot.lane.b32.xlu1 %v234_v37, %s1249_s1 }
  0xb1   :  { %v236_v35 = vpop.f32.mrf.mxu3 }
  0xb2   :  { %v237_v41 = vadd.f32 %v1140_v34, %v236_v35 }
  0xb4   :  { %689 = vrot.lane.b32.xlu1 %v237_v41, %s1249_s1 }
  0xb9   :  { %v239_v38 = vpop.f32.mrf.mxu3 }
  0xba   :  { %v240_v39 = vadd.f32 %v1140_v34, %v239_v38 }
  0xbc   :  { %691 = vrot.lane.b32.xlu2 %v240_v39, %s1249_s1 }
  0xc1   :  { %v242_v42 = vpop.f32.mrf.mxu3 }
  0xc2   :  { %v243_v43 = vadd.f32 %v1140_v34, %v242_v42  ;;  %v609_v42 = vld [vmem:[#allocation2] sm:$0xff] }
  0xc3   :  { %649 = vmatpush.msrb.mxu1 %v609_v42 }
  0xc4   :  { %693 = vrot.lane.b32.xlu2 %v243_v43, %s1249_s1 }
  0xc9   :  { %v245_v44 = vpop.f32.mrf.mxu3 }
  0xca   :  { %v246_v45 = vadd.f32 %v1140_v34, %v245_v44 }
  0xcc   :  { %695 = vrot.lane.b32.xlu0 %v246_v45, %s1249_s1 }
  0xd1   :  { %v248_v49 = vpop.f32.mrf.mxu3 }
  0xd2   :  { %v249_v50 = vadd.f32 %v1140_v34, %v248_v49 }
  0xd4   :  { %697 = vrot.lane.b32.xlu1 %v249_v50, %s1249_s1 }
 0x118   :  { %v139_v31 = vpop.f32.mrf.mxu1 }
 0x119   :  { %v140_v32 = vadd.f32 %v1139_v29, %v139_v31 }
 0x11b   :  { %v142_v33 = vmax.f32 %v140_v32, 0.0 }
 0x11d   :  { %1100 = vmatmul.msk.f32.vlgmr.msrb.gmra.mxu2 %vm118_vm1, %v142_v33 }
 0x1a0   :  { %v177_v53 = vpop.f32.mrf.mxu2 }
 0x1a1   :  { %v178_v54 = vadd.f32 %v1141_v52, %v177_v53 }
 0x1a3   :  { %v259_v55 = vperm.slane %v178_v54, 0  ;;  %v252_v57 = vrot.slane %v178_v54, 1  ;;  %v253_v60 = vrot.slane %v178_v54, 2  ;;  %v254_v63 = vrot.slane %v178_v54, 3 }
 0x1a4   :  { %v255_v2 = vrot.slane %v178_v54, 4  ;;  %v256_v5 = vrot.slane %v178_v54, 5  ;;  %v257_v8 = vrot.slane %v178_v54, 6  ;;  %v258_v10 = vrot.slane %v178_v54, 7 }
 0x1a5   :  { %v275_v56 = vmul.f32 %v259_v55, %v228_v36  ;;  %v260_v58 = vperm.slane %v252_v57, 0  ;;  %v261_v61 = vperm.slane %v253_v60, 0  ;;  %v262_v0 = vperm.slane %v254_v63, 0 }
 0x1a6   :  { %v263_v3 = vperm.slane %v255_v2, 0  ;;  %v264_v6 = vperm.slane %v256_v5, 0  ;;  %v265_v9 = vperm.slane %v257_v8, 0  ;;  %v266_v12 = vperm.slane %v258_v10, 0 }
 0x1a7   :  { %1109 = vmatmul.msk.f32.vlgmr.msra.gmra.mxu0 %vm118_vm1, %v275_v56  ;;  %v276_v59 = vmul.f32 %v260_v58, %v231_v40  ;;  %v277_v62 = vmul.f32 %v261_v61, %v234_v37  ;;  %v278_v1 = vmul.f32 %v262_v0, %v237_v41 }
 0x1a8   :  { %v279_v4 = vmul.f32 %v263_v3, %v240_v39  ;;  %v280_v7 = vmul.f32 %v264_v6, %v243_v43  ;;  %v281_v11 = vmul.f32 %v265_v9, %v246_v45  ;;  %v282_v13 = vmul.f32 %v266_v12, %v249_v50 }
 0x1af   :  { %1110 = vmatmul.msk.f32.gmra.mxu0 %vm118_vm1, %v276_v59 }
 0x1b7   :  { %1111 = vmatmul.msk.f32.gmra.mxu0 %vm118_vm1, %v277_v62 }
 0x1bf   :  { %1112 = vmatmul.msk.f32.gmra.mxu0 %vm118_vm1, %v278_v1 }
 0x1c7   :  { %1113 = vmatmul.msk.f32.gmra.mxu0 %vm118_vm1, %v279_v4 }
 0x1cf   :  { %1114 = vmatmul.msk.f32.gmra.mxu0 %vm118_vm1, %v280_v7 }
 0x1d7   :  { %1115 = vmatmul.msk.f32.gmra.mxu0 %vm118_vm1, %v281_v11 }
 0x1df   :  { %1116 = vmatmul.msk.f32.gmra.mxu0 %vm118_vm1, %v282_v13 }
 0x224   :  { %v328_v14 = vpop.f32.mrf.mxu0 }
 0x225   :  { %v353_v15 = vsel %vm352_vm2, %v328_v14, -inf }
 0x226   :  { %v354_v16 = vrot.slane %v353_v15, 4 }
 0x228   :  { %v355_v17 = vmax.f32 %v353_v15, %v354_v16 }
 0x22a   :  { %v356_v18 = vrot.slane %v355_v17, 2 }
 0x22c   :  { %v357_v19 = vmax.f32 %v355_v17, %v356_v18  ;;  %v331_v20 = vpop.f32.mrf.mxu0 }
 0x22d   :  { %v360_v21 = vsel %vm352_vm2, %v331_v20, -inf }
 0x22e   :  { %v358_v22 = vrot.slane %v357_v19, 1  ;;  %v361_v23 = vrot.slane %v360_v21, 4 }
 0x230   :  { %v359_v24 = vmax.f32 %v357_v19, %v358_v22  ;;  %v362_v25 = vmax.f32 %v360_v21, %v361_v23 }
 0x232   :  { %v409_v26 = vsub.f32 %v328_v14, %v359_v24  ;;  %v363_v27 = vrot.slane %v362_v25, 2 }
 0x234   :  { %v417_v28 = vmul.f32 1.442695, %v409_v26  ;;  %v364_v29 = vmax.f32 %v362_v25, %v363_v27  ;;  %v334_v30 = vpop.f32.mrf.mxu0 }
 0x235   :  { %v367_v31 = vsel %vm352_vm2, %v334_v30, -inf }
 0x236   :  { %1153 = vpow2.f32 %v417_v28  ;;  %v365_v32 = vrot.slane %v364_v29, 1  ;;  %v368_v33 = vrot.slane %v367_v31, 4 }
 0x238   :  { %v366_v34 = vmax.f32 %v364_v29, %v365_v32  ;;  %v369_v35 = vmax.f32 %v367_v31, %v368_v33 }
 0x23a   :  { %v410_v36 = vsub.f32 %v331_v20, %v366_v34  ;;  %v370_v37 = vrot.slane %v369_v35, 2 }
 0x23c   :  { %v1457_v38 = vpop.eup %1153  ;;  %v419_v39 = vmul.f32 1.442695, %v410_v36  ;;  %v371_v40 = vmax.f32 %v369_v35, %v370_v37  ;;  %v337_v41 = vpop.f32.mrf.mxu0 }
 0x23d   :  { %v433_v43 = vsel %vm352_vm2, %v1457_v38, 0.0  ;;  %v374_v44 = vsel %vm352_vm2, %v337_v41, -inf }
 0x23e   :  { %v434_v45 = vrot.slane %v433_v43, 4  ;;  %1155 = vpow2.f32 %v419_v39  ;;  %v372_v46 = vrot.slane %v371_v40, 1  ;;  %v375_v47 = vrot.slane %v374_v44, 4 }
 0x240   :  { %v435_v48 = vadd.f32 %v434_v45, %v433_v43  ;;  %v373_v49 = vmax.f32 %v371_v40, %v372_v46  ;;  %v376_v50 = vmax.f32 %v374_v44, %v375_v47 }
 0x242   :  { %v436_v51 = vrot.slane %v435_v48, 2  ;;  %v411_v52 = vsub.f32 %v334_v30, %v373_v49  ;;  %v377_v53 = vrot.slane %v376_v50, 2 }
 0x244   :  { %v1462_v54 = vpop.eup %1155  ;;  %v437_v55 = vadd.f32 %v436_v51, %v435_v48  ;;  %v421_v56 = vmul.f32 1.442695, %v411_v52  ;;  %v378_v57 = vmax.f32 %v376_v50, %v377_v53  ;;  %v340_v58 = vpop.f32.mrf.mxu0 }
 0x245   :  { %v440_v59 = vsel %vm352_vm2, %v1462_v54, 0.0  ;;  %v381_v60 = vsel %vm352_vm2, %v340_v58, -inf }
 0x246   :  { %v438_v61 = vrot.slane %v437_v55, 1  ;;  %v441_v62 = vrot.slane %v440_v59, 4  ;;  %1157 = vpow2.f32 %v421_v56  ;;  %v379_v63 = vrot.slane %v378_v57, 1 }
 0x247   :  { %v382_v0 = vrot.slane %v381_v60, 4 }
 0x248   :  { %v439_v1 = vadd.f32 %v438_v61, %v437_v55  ;;  %v442_v2 = vadd.f32 %v441_v62, %v440_v59  ;;  %v380_v3 = vmax.f32 %v378_v57, %v379_v63 }
 0x249   :  { %v383_v4 = vmax.f32 %v381_v60, %v382_v0 }
 0x24a   :  { %1159 = vrcp.f32 %v439_v1  ;;  %v443_v5 = vrot.slane %v442_v2, 2  ;;  %v412_v6 = vsub.f32 %v337_v41, %v380_v3  ;;  %v498_v29 = vand.u32 2147483647, %v439_v1 }
 0x24b   :  { %v384_v7 = vrot.slane %v383_v4, 2  ;;  %v500_v34 = vand.u32 2147483648, %v439_v1  ;;  %vm494_vm4 = vweird.f32 %v439_v1 }
 0x24c   :  { %v1467_v8 = vpop.eup %1157  ;;  %v444_v9 = vadd.f32 %v443_v5, %v442_v2  ;;  %v423_v10 = vmul.f32 1.442695, %v412_v6  ;;  %v343_v11 = vpop.f32.mrf.mxu0  ;;  %vm499_vm6 = vcmp.eq.f32.partialorder %v498_v29, 8.507059e+37 }
 0x24d   :  { %v447_v12 = vsel %vm352_vm2, %v1467_v8, 0.0  ;;  %v385_v13 = vmax.f32 %v383_v4, %v384_v7  ;;  %v388_v14 = vsel %vm352_vm2, %v343_v11, -inf  ;;  %v501_v51 = vor.u32 1.1754944e-38, %v500_v34 }
 0x24e   :  { %v445_v15 = vrot.slane %v444_v9, 1  ;;  %v448_v16 = vrot.slane %v447_v12, 4  ;;  %1161 = vpow2.f32 %v423_v10  ;;  %v389_v17 = vrot.slane %v388_v14, 4 }
 0x24f   :  { %v386_v18 = vrot.slane %v385_v13, 1 }
 0x250   :  { %v1160_v19 = vpop.eup %1159  ;;  %v1472_v20 = vadd.f32 %v445_v15, %v444_v9  ;;  %v449_v21 = vadd.f32 %v448_v16, %v447_v12  ;;  %v390_v22 = vmax.f32 %v388_v14, %v389_v17 }
 0x251   :  { %v387_v23 = vmax.f32 %v385_v13, %v386_v18  ;;  %v490_v24 = vmul.f32 %v1160_v19, %v439_v1  ;;  %vm495_vm3 = vweird.f32 %v1160_v19 }
 0x252   :  { %1163 = vrcp.f32 %v1472_v20  ;;  %v450_v25 = vrot.slane %v449_v21, 2  ;;  %v391_v26 = vrot.slane %v390_v22, 2  ;;  %vm496_vm5 = vmor %vm494_vm4, %vm495_vm3  ;;  %v513_v59 = vand.u32 2147483647, %v1472_v20 }
 0x253   :  { %v413_v27 = vsub.f32 %v340_v58, %v387_v23  ;;  %v491_v28 = vsub.f32 1.0, %v490_v24  ;;  %v515_v60 = vand.u32 2147483648, %v1472_v20  ;;  %vm509_vm8 = vweird.f32 %v1472_v20 }
 0x254   :  { %v1475_v30 = vpop.eup %1161  ;;  %v451_v31 = vadd.f32 %v450_v25, %v449_v21  ;;  %v392_v32 = vmax.f32 %v390_v22, %v391_v26  ;;  %v1477_v33 = vpop.f32.mrf.mxu0  ;;  %vm514_vm10 = vcmp.eq.f32.partialorder %v513_v59, 8.507059e+37 }
 0x255   :  { %v454_v35 = vsel %vm352_vm2, %v1475_v30, 0.0  ;;  %v425_v36 = vmul.f32 1.442695, %v413_v27  ;;  %v395_v37 = vsel %vm352_vm2, %v1477_v33, -inf  ;;  %v492_v39 = vmul.f32 %v1160_v19, %v491_v28 }
 0x256   :  { %v452_v40 = vrot.slane %v451_v31, 1  ;;  %v455_v41 = vrot.slane %v454_v35, 4  ;;  %v393_v42 = vrot.slane %v392_v32, 1  ;;  %v396_v43 = vrot.slane %v395_v37, 4 }
 0x257   :  { %1165 = vpow2.f32 %v425_v36  ;;  %v493_v44 = vadd.f32 %v1160_v19, %v492_v39  ;;  %v516_v14 = vor.u32 1.1754944e-38, %v515_v60 }
 0x258   :  { %v1164_v45 = vpop.eup %1163  ;;  %v1483_v46 = vadd.f32 %v452_v40, %v451_v31  ;;  %v456_v47 = vadd.f32 %v455_v41, %v454_v35  ;;  %v394_v48 = vmax.f32 %v392_v32, %v393_v42  ;;  %v397_v49 = vmax.f32 %v395_v37, %v396_v43 }
 0x259   :  { %v497_v50 = vsel %vm496_vm5, %v1160_v19, %v493_v44  ;;  %v505_v52 = vmul.f32 %v1164_v45, %v1472_v20  ;;  %vm510_vm7 = vweird.f32 %v1164_v45 }
 0x25a   :  { %1167 = vrcp.f32 %v1483_v46  ;;  %v457_v53 = vrot.slane %v456_v47, 2  ;;  %v414_v55 = vsub.f32 %v343_v11, %v394_v48  ;;  %v398_v56 = vrot.slane %v397_v49, 2  ;;  %vm511_vm9 = vmor %vm509_vm8, %vm510_vm7 }
 0x25b   :  { %v502_v57 = vsel %vm499_vm6, %v501_v51, %v497_v50  ;;  %v506_v58 = vsub.f32 1.0, %v505_v52  ;;  %v528_v27 = vand.u32 2147483647, %v1483_v46  ;;  %v530_v28 = vand.u32 2147483648, %v1483_v46 }
 0x25c   :  { %v458_v61 = vadd.f32 %v457_v53, %v456_v47  ;;  %v427_v62 = vmul.f32 1.442695, %v414_v55  ;;  %v399_v63 = vmax.f32 %v397_v49, %v398_v56  ;;  %v1490_v0 = vpop.f32.mrf.mxu0  ;;  %v503_v1 = vmul.f32 %v1457_v38, %v502_v57 }
 0x25d   :  { %v1493_v2 = vpop.eup %1165  ;;  %v402_v3 = vsel %vm352_vm2, %v1490_v0, -inf  ;;  %v507_v4 = vmul.f32 %v1164_v45, %v506_v58  ;;  %vm524_vm12 = vweird.f32 %v1483_v46  ;;  %vm529_vm14 = vcmp.eq.f32.partialorder %v528_v27, 8.507059e+37 }
 0x25e   :  { %v459_v5 = vrot.slane %v458_v61, 1  ;;  %v461_v6 = vsel %vm352_vm2, %v1493_v2, 0.0  ;;  %1169 = vpow2.f32 %v427_v62  ;;  %v400_v7 = vrot.slane %v399_v63, 1  ;;  %1117 = vmatmul.msk.f32.vlgmr.msrb.gmra.mxu1 %vm352_vm2, %v503_v1 }
 0x25f   :  { %v462_v9 = vrot.slane %v461_v6, 4  ;;  %v403_v10 = vrot.slane %v402_v3, 4  ;;  %v508_v11 = vadd.f32 %v1164_v45, %v507_v4  ;;  %v531_v40 = vor.u32 1.1754944e-38, %v530_v28 }
 0x260   :  { %v1168_v38 = vpop.eup %1167  ;;  %v1501_v12 = vadd.f32 %v459_v5, %v458_v61  ;;  %v401_v13 = vmax.f32 %v399_v63, %v400_v7 }
 0x261   :  { %v463_v15 = vadd.f32 %v462_v9, %v461_v6  ;;  %v404_v16 = vmax.f32 %v402_v3, %v403_v10  ;;  %v512_v17 = vsel %vm511_vm9, %v1164_v45, %v508_v11  ;;  %v520_v18 = vmul.f32 %v1168_v38, %v1483_v46 }
 0x262   :  { %1171 = vrcp.f32 %v1501_v12  ;;  %v415_v19 = vsub.f32 %v1477_v33, %v401_v13  ;;  %v517_v21 = vsel %vm514_vm10, %v516_v14, %v512_v17  ;;  %vm525_vm11 = vweird.f32 %v1168_v38 }
 0x263   :  { %v464_v22 = vrot.slane %v463_v15, 2  ;;  %v405_v23 = vrot.slane %v404_v16, 2  ;;  %v518_v20 = vmul.f32 %v1462_v54, %v517_v21  ;;  %v521_v24 = vsub.f32 1.0, %v520_v18  ;;  %vm526_vm13 = vmor %vm524_vm12, %vm525_vm11 }
 0x264   :  { %v1507_v25 = vpop.eup %1169  ;;  %v429_v26 = vmul.f32 1.442695, %v415_v19  ;;  %v543_v52 = vand.u32 2147483647, %v1501_v12  ;;  %v545_v53 = vand.u32 2147483648, %v1501_v12  ;;  %vm539_vm0 = vweird.f32 %v1501_v12 }
 0x265   :  { %v465_v29 = vadd.f32 %v464_v22, %v463_v15  ;;  %v468_v31 = vsel %vm352_vm2, %v1507_v25, 0.0  ;;  %v406_v32 = vmax.f32 %v404_v16, %v405_v23  ;;  %v522_v33 = vmul.f32 %v1168_v38, %v521_v24 }
 0x266   :  { %v469_v34 = vrot.slane %v468_v31, 4  ;;  %1173 = vpow2.f32 %v429_v26  ;;  %1118 = vmatmul.msk.f32.gmra.mxu1 %vm352_vm2, %v518_v20  ;;  %v546_v62 = vor.u32 1.1754944e-38, %v545_v53  ;;  %vm544_vm4 = vcmp.eq.f32.partialorder %v543_v52, 8.507059e+37 }
 0x267   :  { %v466_v54 = vrot.slane %v465_v29, 1  ;;  %v407_v35 = vrot.slane %v406_v32, 1  ;;  %v523_v36 = vadd.f32 %v1168_v38, %v522_v33 }
 0x268   :  { %v1172_v37 = vpop.eup %1171  ;;  %v470_v39 = vadd.f32 %v469_v34, %v468_v31 }
 0x269   :  { %v467_v41 = vadd.f32 %v466_v54, %v465_v29  ;;  %v408_v42 = vmax.f32 %v406_v32, %v407_v35  ;;  %v527_v43 = vsel %vm526_vm13, %v1168_v38, %v523_v36  ;;  %v535_v44 = vmul.f32 %v1172_v37, %v1501_v12 }
 0x26a   :  { %v471_v45 = vrot.slane %v470_v39, 2  ;;  %v532_v47 = vsel %vm529_vm14, %v531_v40, %v527_v43  ;;  %vm540_vm15 = vweird.f32 %v1172_v37 }
 0x26b   :  { %1175 = vrcp.f32 %v467_v41  ;;  %v416_v48 = vsub.f32 %v1490_v0, %v408_v42  ;;  %v533_v49 = vmul.f32 %v1467_v8, %v532_v47  ;;  %v536_v50 = vsub.f32 1.0, %v535_v44  ;;  %vm541_vm3 = vmor %vm539_vm0, %vm540_vm15 }
 0x26c   :  { %v1519_v46 = vpop.eup %1173  ;;  %v472_v51 = vadd.f32 %v471_v45, %v470_v39  ;;  %v558_v10 = vand.u32 2147483647, %v467_v41  ;;  %v560_v11 = vand.u32 2147483648, %v467_v41  ;;  %vm554_vm6 = vweird.f32 %v467_v41 }
 0x26d   :  { %v475_v55 = vsel %vm352_vm2, %v1519_v46, 0.0  ;;  %v431_v56 = vmul.f32 1.442695, %v416_v48  ;;  %v537_v57 = vmul.f32 %v1172_v37, %v536_v50 }
 0x26e   :  { %v473_v58 = vrot.slane %v472_v51, 1  ;;  %v476_v59 = vrot.slane %v475_v55, 4  ;;  %1119 = vmatmul.msk.f32.gmra.mxu1 %vm352_vm2, %v533_v49  ;;  %v561_v18 = vor.u32 1.1754944e-38, %v560_v11  ;;  %vm559_vm8 = vcmp.eq.f32.partialorder %v558_v10, 8.507059e+37  ;;  %v773_v11 = vld [vmem:[%s1750_s8 + $0x10] sm:$0xff] }
 0x26f   :  { %1177 = vpow2.f32 %v431_v56  ;;  %v538_v8 = vadd.f32 %v1172_v37, %v537_v57 }
 0x270   :  { %v474_v60 = vadd.f32 %v473_v58, %v472_v51  ;;  %v477_v61 = vadd.f32 %v476_v59, %v475_v55 }
 0x271   :  { %v1176_v63 = vpop.eup %1175  ;;  %v542_v0 = vsel %vm541_vm3, %v1172_v37, %v538_v8 }
 0x272   :  { %1179 = vrcp.f32 %v474_v60  ;;  %v478_v1 = vrot.slane %v477_v61, 2  ;;  %v547_v3 = vsel %vm544_vm4, %v546_v62, %v542_v0  ;;  %v550_v4 = vmul.f32 %v1176_v63, %v467_v41  ;;  %v692_v0 = vpop.permute.xlu2 %691 }
 0x273   :  { %v548_v5 = vmul.f32 %v1475_v30, %v547_v3  ;;  %vm555_vm5 = vweird.f32 %v1176_v63  ;;  %v575_v26 = vand.u32 2147483648, %v474_v60  ;;  %v573_v29 = vand.u32 2147483647, %v474_v60 }
 0x274   :  { %v479_v6 = vadd.f32 %v478_v1, %v477_v61  ;;  %v551_v7 = vsub.f32 1.0, %v550_v4  ;;  %vm556_vm7 = vmor %vm554_vm6, %vm555_vm5  ;;  %vm569_vm10 = vweird.f32 %v474_v60  ;;  %v684_v61 = vpop.permute.xlu0 %683 }
 0x275   :  { %v1528_v9 = vpop.eup %1177  ;;  %v576_v34 = vor.u32 1.1754944e-38, %v575_v26  ;;  %vm574_vm12 = vcmp.eq.f32.partialorder %v573_v29, 8.507059e+37  ;;  %v822_v29 = vld [vmem:[%s1751_s9 + $0x8] sm:$0xff] }
 0x276   :  { %v480_v38 = vrot.slane %v479_v6, 1  ;;  %v482_v12 = vsel %vm352_vm2, %v1528_v9, 0.0  ;;  %1120 = vmatmul.msk.f32.gmra.mxu1 %vm352_vm2, %v548_v5  ;;  %v552_v13 = vmul.f32 %v1176_v63, %v551_v7  ;;  %v774_v5 = vld [vmem:[%s1750_s8 + $0x18] sm:$0xff] }
 0x277   :  { %v483_v14 = vrot.slane %v482_v12, 4  ;;  %813 = vmatpush.msra.mxu2 %v774_v5 }
 0x278   :  { %v1180_v15 = vpop.eup %1179  ;;  %v481_v16 = vadd.f32 %v480_v38, %v479_v6  ;;  %v553_v17 = vadd.f32 %v1176_v63, %v552_v13 }
 0x279   :  { %v484_v30 = vadd.f32 %v483_v14, %v482_v12  ;;  %v565_v19 = vmul.f32 %v1180_v15, %v474_v60  ;;  %vm570_vm9 = vweird.f32 %v1180_v15  ;;  %814 = vmatpush.msra.mxu2 %v773_v11  ;;  %v772_v12 = vld [vmem:[%s1750_s8 + $0x8] sm:$0xff]  ;;  %v771_v14 = vld [vmem:[%s1750_s8] sm:$0xff] }
 0x27a   :  { %1181 = vrcp.f32 %v481_v16  ;;  %v557_v21 = vsel %vm556_vm7, %v1176_v63, %v553_v17  ;;  %vm571_vm11 = vmor %vm569_vm10, %vm570_vm9  ;;  %v590_v40 = vand.u32 2147483648, %v481_v16  ;;  %v588_v42 = vand.u32 2147483647, %v481_v16  ;;  %v688_v63 = vpop.permute.xlu1 %687 }
 0x27b   :  { %v485_v22 = vrot.slane %v484_v30, 2  ;;  %v562_v23 = vsel %vm559_vm8, %v561_v18, %v557_v21  ;;  %v566_v20 = vsub.f32 1.0, %v565_v19  ;;  %vm584_vm14 = vweird.f32 %v481_v16  ;;  %815 = vmatpush.msra.mxu2 %v772_v12  ;;  %v824_v21 = vld [vmem:[%s1751_s9 + $0x18] sm:$0xff] }
 0x27c   :  { %v563_v24 = vmul.f32 %v1493_v2, %v562_v23  ;;  %v591_v44 = vor.u32 1.1754944e-38, %v590_v40  ;;  %vm589_vm0 = vcmp.eq.f32.partialorder %v588_v42, 8.507059e+37  ;;  %v686_v3 = vpop.permute.xlu0 %685  ;;  %vm787_vm7 = vcmask 1042434  }
 0x27d   :  { %v486_v27 = vadd.f32 %v485_v22, %v484_v30  ;;  %v567_v28 = vmul.f32 %v1180_v15, %v566_v20  ;;  %816 = vmatpush.msra.mxu2 %v771_v14  ;;  %v823_v20 = vld [vmem:[%s1751_s9 + $0x10] sm:$0xff]  ;;  %vm789_vm8 = vcmask 1043459   ;;  %vm791_vm9 = vcmask 1044484  }
 0x27e   :  { %1121 = vmatmul.msk.f32.gmra.mxu1 %vm352_vm2, %v563_v24  ;;  %vm793_vm10 = vcmask 1045509  }
 0x27f   :  { %v487_v31 = vrot.slane %v486_v27, 1  ;;  %v568_v32 = vadd.f32 %v1180_v15, %v567_v28  ;;  %842 = vmatpush.msrb.mxu2 %v824_v21 }
 0x280   :  { %v1182_v33 = vpop.eup %1181 }
 0x281   :  { %v488_v54 = vadd.f32 %v487_v31, %v486_v27  ;;  %v572_v35 = vsel %vm571_vm11, %v1180_v15, %v568_v32  ;;  %v580_v36 = vmul.f32 %v1182_v33, %v481_v16  ;;  %vm585_vm13 = vweird.f32 %v1182_v33  ;;  %v694_v15 = vpop.permute.xlu2 %693  ;;  %843 = vmatpush.msrb.mxu2 %v823_v20 }
 0x282   :  { %v577_v37 = vsel %vm574_vm12, %v576_v34, %v572_v35  ;;  %vm586_vm15 = vmor %vm584_vm14, %vm585_vm13  ;;  %v690_v6 = vpop.permute.xlu1 %689  ;;  %vm795_vm11 = vcmask 1046534   ;;  %vm797_vm12 = vcmask 1047559  }
 0x283   :  { %1183 = vrcp.f32 %v488_v54  ;;  %v578_v2 = vmul.f32 %v1507_v25, %v577_v37  ;;  %v581_v39 = vsub.f32 1.0, %v580_v36  ;;  %v605_v25 = vand.u32 2147483648, %v488_v54  ;;  %844 = vmatpush.msrb.mxu2 %v822_v29 }
 0x284   :  { %v603_v53 = vand.u32 2147483647, %v488_v54  ;;  %vm599_vm4 = vweird.f32 %v488_v54 }
 0x285   :  { %v582_v41 = vmul.f32 %v1182_v33, %v581_v39  ;;  %v606_v56 = vor.u32 1.1754944e-38, %v605_v25 }
 0x286   :  { %1122 = vmatmul.msk.f32.gmra.mxu1 %vm352_vm2, %v578_v2  ;;  %vm604_vm6 = vcmp.eq.f32.partialorder %v603_v53, 8.507059e+37 }
 0x287   :  { %v583_v43 = vadd.f32 %v1182_v33, %v582_v41 }
 0x289   :  { %v1184_v45 = vpop.eup %1183  ;;  %v587_v47 = vsel %vm586_vm15, %v1182_v33, %v583_v43 }
 0x28a   :  { %v592_v48 = vsel %vm589_vm0, %v591_v44, %v587_v47  ;;  %v595_v49 = vmul.f32 %v1184_v45, %v488_v54  ;;  %vm600_vm3 = vweird.f32 %v1184_v45  ;;  %v696_v54 = vpop.permute.xlu0 %695 }
 0x28b   :  { %v593_v50 = vmul.f32 %v1519_v46, %v592_v48  ;;  %vm601_vm5 = vmor %vm599_vm4, %vm600_vm3 }
 0x28c   :  { %v596_v51 = vsub.f32 1.0, %v595_v49 }
 0x28e   :  { %1123 = vmatmul.msk.f32.gmra.mxu1 %vm352_vm2, %v593_v50  ;;  %v597_v52 = vmul.f32 %v1184_v45, %v596_v51 }
 0x290   :  { %v598_v55 = vadd.f32 %v1184_v45, %v597_v52  ;;  %v698_v52 = vpop.permute.xlu1 %697 }
 0x292   :  { %v602_v57 = vsel %vm601_vm5, %v1184_v45, %v598_v55 }
 0x293   :  { %v607_v58 = vsel %vm604_vm6, %v606_v56, %v602_v57 }
 0x294   :  { %v608_v59 = vmul.f32 %v1528_v9, %v607_v58 }
 0x296   :  { %1124 = vmatmul.msk.f32.gmra.mxu1 %vm352_vm2, %v608_v59  ;;  %vm785_vm2 = vcmask 1041409  }
 0x2db   :  { %v651_v8 = vpop.f32.mrf.mxu1 }
 0x2dc   :  { %v707_v9 = vmul.f32 %v684_v61, %v651_v8 }
 0x2de   :  { %v715_v30 = vsel %vm118_vm1, %v707_v9, 0.0 }
 0x2df   :  { %v716_v27 = vrot.slane %v715_v30, 4 }
 0x2e1   :  { %v717_v35 = vadd.f32 %v716_v27, %v715_v30  ;;  %v853_v27 = vld [vmem:[#allocation4 + $0x10] sm:$0xff] }
 0x2e3   :  { %v654_v46 = vpop.f32.mrf.mxu1  ;;  %v718_v44 = vrot.slane %v717_v35, 2 }
 0x2e4   :  { %v708_v4 = vmul.f32 %v686_v3, %v654_v46 }
 0x2e5   :  { %v719_v53 = vadd.f32 %v718_v44, %v717_v35  ;;  %v886_v35 = vld [vmem:[%s1753_s11 + $0x28] sm:$0xff] }
 0x2e6   :  { %v722_v13 = vsel %vm118_vm1, %v708_v4, 0.0 }
 0x2e7   :  { %v723_v22 = vrot.slane %v722_v13, 4 }
 0x2e9   :  { %v724_v32 = vadd.f32 %v723_v22, %v722_v13 }
 0x2eb   :  { %v657_v60 = vpop.f32.mrf.mxu1  ;;  %v725_v40 = vrot.slane %v724_v32, 2 }
 0x2ec   :  { %v709_v7 = vmul.f32 %v688_v63, %v657_v60  ;;  %v720_v63 = vrot.slane %v719_v53, 1 }
 0x2ed   :  { %v726_v49 = vadd.f32 %v725_v40, %v724_v32  ;;  %v852_v32 = vld [vmem:[#allocation4 + $0x8] sm:$0xff]  ;;  %v881_v40 = vld [vmem:[%s1753_s11] sm:$0xff] }
 0x2ee   :  { %v729_v16 = vsel %vm118_vm1, %v709_v7, 0.0 }
 0x2ef   :  { %v730_v24 = vrot.slane %v729_v16, 4  ;;  %v727_v8 = vrot.slane %v726_v49, 1 }
 0x2f1   :  { %v731_v34 = vadd.f32 %v730_v24, %v729_v16  ;;  %v728_v4 = vadd.f32 %v727_v8, %v726_v49  ;;  %v821_v24 = vld [vmem:[%s1751_s9] sm:$0xff] }
 0x2f2   :  { %845 = vmatpush.msrb.mxu2 %v821_v24  ;;  %v992_v49 = vld [vmem:[%s1755_s13 + $0x20] sm:$0xff] }
 0x2f3   :  { %v660_v62 = vpop.f32.mrf.mxu1  ;;  %v732_v42 = vrot.slane %v731_v34, 2 }
 0x2f4   :  { %v710_v10 = vmul.f32 %v690_v6, %v660_v62 }
 0x2f5   :  { %v733_v25 = vadd.f32 %v732_v42, %v731_v34  ;;  %v888_v34 = vld [vmem:[%s1753_s11 + $0x38] sm:$0xff] }
 0x2f6   :  { %v736_v18 = vsel %vm118_vm1, %v710_v10, 0.0  ;;  %v721_v10 = vadd.f32 %v720_v63, %v719_v53  ;;  %v1144_v53 = vld [vmem:[#allocation4 + $0x20] ss:$0 sm:$0xff]  ;;  %v1250_v63 = vmov 128.0  }
 0x2f7   :  { %v737_v28 = vrot.slane %v736_v18, 4  ;;  %v734_v60 = vrot.slane %v733_v25, 1  ;;  %1185 = vrcp.f32 %v1250_v63  ;;  %v1148_v63 = vld [vmem:[%s1753_s11 + $0x50] ss:$0 sm:$0xff] }
 0x2f8   :  { %v786_v13 = vsel %vm785_vm2, %v728_v4, %v721_v10  ;;  %v964_v4 = vld [vmem:[%s1754_s12 + $0x78] sm:$0xff]  ;;  %v962_v10 = vld [vmem:[%s1754_s12 + $0x68] sm:$0xff] }
 0x2f9   :  { %v738_v36 = vadd.f32 %v737_v28, %v736_v18  ;;  %v735_v7 = vadd.f32 %v734_v60, %v733_v25  ;;  %v1142_v28 = vld [vmem:[%s1750_s8 + $0x20] ss:$0 sm:$0xff]  ;;  %v989_v25 = vld [vmem:[%s1755_s13 + $0x8] sm:$0xff]  ;;  %967 = vmatpush.msrb.mxu3 %v964_v4 }
 0x2fb   :  { %v663_v1 = vpop.f32.mrf.mxu1  ;;  %v739_v45 = vrot.slane %v738_v36, 2  ;;  %v788_v16 = vsel %vm787_vm7, %v735_v7, %v786_v13 }
 0x2fc   :  { %v711_v38 = vmul.f32 %v692_v0, %v663_v1 }
 0x2fd   :  { %v740_v55 = vadd.f32 %v739_v45, %v738_v36  ;;  %v885_v36 = vld [vmem:[%s1753_s11 + $0x20] sm:$0xff]  ;;  %v995_v45 = vld [vmem:[%s1755_s13 + $0x38] sm:$0xff] }
 0x2fe   :  { %v743_v23 = vsel %vm118_vm1, %v711_v38, 0.0 }
 0x2ff   :  { %v744_v31 = vrot.slane %v743_v23, 4  ;;  %v741_v0 = vrot.slane %v740_v55, 1 }
 0x301   :  { %v745_v2 = vadd.f32 %v744_v31, %v743_v23  ;;  %v742_v11 = vadd.f32 %v741_v0, %v740_v55  ;;  %v1186_v0 = vpop.eup %1185 }
 0x302   :  { %vm924_vm13 = vweird.f32 %v1186_v0 }
 0x303   :  { %v666_v17 = vpop.f32.mrf.mxu1  ;;  %v746_v48 = vrot.slane %v745_v2, 2  ;;  %v790_v30 = vsel %vm789_vm8, %v742_v11, %v788_v16  ;;  %v1059_v11 = vld [vmem:[%s1756_s14 + $0x28] sm:$0xff]  ;;  %v959_v16 = vld [vmem:[%s1754_s12 + $0x50] sm:$0xff] }
 0x304   :  { %v712_v19 = vmul.f32 %v694_v15, %v666_v17 }
 0x305   :  { %v747_v58 = vadd.f32 %v746_v48, %v745_v2  ;;  %v883_v2 = vld [vmem:[%s1753_s11 + $0x10] sm:$0xff]  ;;  %v993_v48 = vld [vmem:[%s1755_s13 + $0x28] sm:$0xff] }
 0x306   :  { %v750_v26 = vsel %vm118_vm1, %v712_v19, 0.0 }
 0x307   :  { %v751_v33 = vrot.slane %v750_v26, 4  ;;  %v748_v3 = vrot.slane %v747_v58, 1 }
 0x309   :  { %v752_v41 = vadd.f32 %v751_v33, %v750_v26  ;;  %v749_v12 = vadd.f32 %v748_v3, %v747_v58  ;;  %v854_v26 = vld [vmem:[#allocation4 + $0x18] sm:$0xff]  ;;  %v851_v33 = vld [vmem:[#allocation4] sm:$0xff]  ;;  %v1251_v3 = vmov 64.0  }
 0x30a   :  { %v1145_v58 = vld [vmem:[%s1753_s11 + $0x40] ss:$0 sm:$0xff]  ;;  %1187 = vrcp.f32 %v1251_v3 }
 0x30b   :  { %v669_v37 = vpop.f32.mrf.mxu1  ;;  %v753_v50 = vrot.slane %v752_v41, 2  ;;  %v792_v19 = vsel %vm791_vm9, %v749_v12, %v790_v30  ;;  %v961_v12 = vld [vmem:[%s1754_s12 + $0x60] sm:$0xff] }
 0x30c   :  { %v713_v39 = vmul.f32 %v696_v54, %v669_v37  ;;  %v887_v54 = vld [vmem:[%s1753_s11 + $0x30] sm:$0xff]  ;;  %v884_v37 = vld [vmem:[%s1753_s11 + $0x18] sm:$0xff] }
 0x30d   :  { %v754_v46 = vadd.f32 %v753_v50, %v752_v41  ;;  %v1143_v41 = vld [vmem:[%s1751_s9 + $0x20] ss:$0 sm:$0xff]  ;;  %v991_v50 = vld [vmem:[%s1755_s13 + $0x18] sm:$0xff] }
 0x30e   :  { %v757_v43 = vsel %vm118_vm1, %v713_v39, 0.0  ;;  %v882_v39 = vld [vmem:[%s1753_s11 + $0x8] sm:$0xff] }
 0x30f   :  { %v758_v47 = vrot.slane %v757_v43, 4  ;;  %v755_v5 = vrot.slane %v754_v46, 1 }
 0x311   :  { %v759_v51 = vadd.f32 %v758_v47, %v757_v43  ;;  %v756_v14 = vadd.f32 %v755_v5, %v754_v46  ;;  %v994_v47 = vld [vmem:[%s1755_s13 + $0x30] sm:$0xff]  ;;  %v1146_v46 = vld [vmem:[%s1755_s13 + $0x40] ss:$0 sm:$0xff] }
 0x312   :  { %v963_v5 = vld [vmem:[%s1754_s12 + $0x70] sm:$0xff] }
 0x313   :  { %v760_v56 = vrot.slane %v759_v51, 2  ;;  %v672_v57 = vpop.f32.mrf.mxu1  ;;  %v794_v22 = vsel %vm793_vm10, %v756_v14, %v792_v19  ;;  %968 = vmatpush.msrb.mxu3 %v963_v5  ;;  %v957_v19 = vld [vmem:[%s1754_s12 + $0x40] sm:$0xff] }
 0x314   :  { %v714_v59 = vmul.f32 %v698_v52, %v672_v57  ;;  %v988_v52 = vld [vmem:[%s1755_s13] sm:$0xff] }
 0x315   :  { %v761_v61 = vadd.f32 %v760_v56, %v759_v51  ;;  %v990_v51 = vld [vmem:[%s1755_s13 + $0x10] sm:$0xff]  ;;  %969 = vmatpush.msrb.mxu3 %v962_v10 }
 0x316   :  { %v764_v62 = vsel %vm118_vm1, %v714_v59, 0.0 }
 0x317   :  { %v765_v1 = vrot.slane %v764_v62, 4  ;;  %v762_v9 = vrot.slane %v761_v61, 1  ;;  %970 = vmatpush.msrb.mxu3 %v961_v12 }
 0x319   :  { %v766_v6 = vadd.f32 %v765_v1, %v764_v62  ;;  %v763_v17 = vadd.f32 %v762_v9, %v761_v61  ;;  %v920_v1 = vmul.f32 128.0, %v1186_v0  ;;  %v1060_v9 = vld [vmem:[%s1756_s14 + $0x30] sm:$0xff] }
 0x31b   :  { %v767_v38 = vrot.slane %v766_v6, 2  ;;  %v796_v23 = vsel %vm795_vm11, %v763_v17, %v794_v22  ;;  %v921_v7 = vsub.f32 1.0, %v920_v1 }
 0x31d   :  { %v768_v15 = vadd.f32 %v767_v38, %v766_v6  ;;  %v1061_v6 = vld [vmem:[%s1756_s14 + $0x38] sm:$0xff]  ;;  %v1188_v38 = vpop.eup %1187  ;;  %v922_v13 = vmul.f32 %v1186_v0, %v921_v7 }
 0x31e   :  { %1075 = vmatpush.msrb.mxu0 %v1061_v6  ;;  %v1024_v14 = vmul.f32 64.0, %v1188_v38  ;;  %vm1028_vm14 = vweird.f32 %v1188_v38 }
 0x31f   :  { %v769_v18 = vrot.slane %v768_v15, 1  ;;  %v923_v17 = vadd.f32 %v1186_v0, %v922_v13 }
 0x320   :  { %1076 = vmatpush.msrb.mxu0 %v1060_v9  ;;  %v1025_v30 = vsub.f32 1.0, %v1024_v14  ;;  %v1149_v9 = vld [vmem:[%s1755_s13 + $0x48] ss:$0 sm:$0xff] }
 0x321   :  { %v770_v21 = vadd.f32 %v769_v18, %v768_v15  ;;  %v960_v15 = vld [vmem:[%s1754_s12 + $0x58] sm:$0xff]  ;;  %v958_v18 = vld [vmem:[%s1754_s12 + $0x48] sm:$0xff] }
 0x322   :  { %1077 = vmatpush.msrb.mxu0 %v1059_v11  ;;  %971 = vmatpush.msrb.mxu3 %v960_v15  ;;  %v1026_v22 = vmul.f32 %v1188_v38, %v1025_v30  ;;  %v1151_v15 = vld [vmem:[%s1754_s12 + $0x80] ss:$0 sm:$0xff] }
 0x323   :  { %v798_v20 = vsel %vm797_vm12, %v770_v21, %v796_v23  ;;  %v925_v21 = vsel %vm924_vm13, %v1186_v0, %v923_v17  ;;  %v1152_v30 = vld [vmem:[%s1756_s14 + $0x40] ss:$0 sm:$0xff] }
 0x324   :  { %1125 = vmatmul.msk.f32.vlgmr.msra.gmra.mxu2 %vm118_vm1, %v798_v20  ;;  %972 = vmatpush.msrb.mxu3 %v959_v16 }
 0x325   :  { %872 = vmatpush.msra.mxu2 %v854_v26  ;;  %v1027_v26 = vadd.f32 %v1188_v38, %v1026_v22 }
 0x326   :  { %973 = vmatpush.msrb.mxu3 %v958_v18 }
 0x327   :  { %873 = vmatpush.msra.mxu2 %v853_v27 }
 0x328   :  { %974 = vmatpush.msrb.mxu3 %v957_v19 }
 0x329   :  { %874 = vmatpush.msra.mxu2 %v852_v32 }
 0x32b   :  { %875 = vmatpush.msra.mxu2 %v851_v33 }
 0x3a7   :  { %v818_v29 = vpop.f32.mrf.mxu2 }
 0x3a8   :  { %v819_v31 = vadd.f32 %v1142_v28, %v818_v29  ;;  %v1029_v28 = vsel %vm1028_vm14, %v1188_v38, %v1027_v26  ;;  %v1150_v38 = vld [vmem:[%s1755_s13 + $0x50] ss:$0 sm:$0xff] }
 0x3aa   :  { %1126 = vmatmul.msk.f32.vlgmr.msrb.gmra.mxu2 %vm118_vm1, %v819_v31 }
 0x3ab   :  { %903 = vmatpush.msrb.mxu2 %v888_v34 }
 0x3ad   :  { %904 = vmatpush.msrb.mxu2 %v887_v54  ;;  %v956_v54 = vld [vmem:[%s1754_s12 + $0x38] sm:$0xff] }
 0x3ae   :  { %975 = vmatpush.msrb.mxu3 %v956_v54 }
 0x3af   :  { %905 = vmatpush.msrb.mxu2 %v886_v35  ;;  %v955_v35 = vld [vmem:[%s1754_s12 + $0x30] sm:$0xff] }
 0x3b0   :  { %976 = vmatpush.msrb.mxu3 %v955_v35 }
 0x3b1   :  { %906 = vmatpush.msrb.mxu2 %v885_v36  ;;  %v954_v36 = vld [vmem:[%s1754_s12 + $0x28] sm:$0xff] }
 0x3b2   :  { %977 = vmatpush.msrb.mxu3 %v954_v36 }
 0x3b3   :  { %907 = vmatpush.msrb.mxu2 %v884_v37  ;;  %v1058_v37 = vld [vmem:[%s1756_s14 + $0x20] sm:$0xff] }
 0x3b4   :  { %1078 = vmatpush.msrb.mxu0 %v1058_v37 }
 0x3b5   :  { %908 = vmatpush.msrb.mxu2 %v883_v2  ;;  %v1057_v2 = vld [vmem:[%s1756_s14 + $0x18] sm:$0xff] }
 0x3b6   :  { %1079 = vmatpush.msrb.mxu0 %v1057_v2 }
 0x3b7   :  { %909 = vmatpush.msrb.mxu2 %v882_v39  ;;  %v953_v39 = vld [vmem:[%s1754_s12 + $0x20] sm:$0xff] }
 0x3b8   :  { %978 = vmatpush.msrb.mxu3 %v953_v39 }
 0x3b9   :  { %910 = vmatpush.msrb.mxu2 %v881_v40  ;;  %v952_v40 = vld [vmem:[%s1754_s12 + $0x18] sm:$0xff] }
 0x3ba   :  { %979 = vmatpush.msrb.mxu3 %v952_v40 }
 0x42d   :  { %v847_v42 = vpop.f32.mrf.mxu2 }
 0x42e   :  { %v848_v43 = vadd.f32 %v1143_v41, %v847_v42  ;;  %v951_v41 = vld [vmem:[%s1754_s12 + $0x10] sm:$0xff]  ;;  %v950_v42 = vld [vmem:[%s1754_s12 + $0x8] sm:$0xff] }
 0x42f   :  { %980 = vmatpush.msrb.mxu3 %v951_v41 }
 0x430   :  { %v850_v44 = vmax.f32 %v848_v43, 0.0  ;;  %v949_v43 = vld [vmem:[%s1754_s12] sm:$0xff] }
 0x431   :  { %981 = vmatpush.msrb.mxu3 %v950_v42 }
 0x432   :  { %1127 = vmatmul.msk.f32.vlgmr.msra.gmra.mxu2 %vm118_vm1, %v850_v44  ;;  %vm891_vm1 = vcmask 523264  }
 0x433   :  { %1006 = vmatpush.msra.mxu2 %v995_v45  ;;  %982 = vmatpush.msrb.mxu3 %v949_v43 }
 0x435   :  { %1007 = vmatpush.msra.mxu2 %v994_v47  ;;  %v1056_v47 = vld [vmem:[%s1756_s14 + $0x10] sm:$0xff] }
 0x436   :  { %1080 = vmatpush.msrb.mxu0 %v1056_v47 }
 0x437   :  { %1008 = vmatpush.msra.mxu2 %v993_v48  ;;  %v1055_v48 = vld [vmem:[%s1756_s14 + $0x8] sm:$0xff] }
 0x438   :  { %1081 = vmatpush.msrb.mxu0 %v1055_v48 }
 0x439   :  { %1009 = vmatpush.msra.mxu2 %v992_v49 }
 0x43b   :  { %1010 = vmatpush.msra.mxu2 %v991_v50  ;;  %v1054_v50 = vld [vmem:[%s1756_s14] sm:$0xff] }
 0x43c   :  { %1082 = vmatpush.msrb.mxu0 %v1054_v50 }
 0x43d   :  { %1011 = vmatpush.msra.mxu2 %v990_v51 }
 0x43f   :  { %1012 = vmatpush.msra.mxu2 %v989_v25 }
 0x441   :  { %1013 = vmatpush.msra.mxu2 %v988_v52 }
 0x4b5   :  { %v877_v55 = vpop.f32.mrf.mxu2 }
 0x4b6   :  { %v878_v56 = vadd.f32 %v1144_v53, %v877_v55 }
 0x4b8   :  { %v880_v57 = vmax.f32 %v878_v56, 0.0 }
 0x4ba   :  { %1128 = vmatmul.msk.f32.vlgmr.msrb.gmra.mxu2 %vm891_vm1, %v880_v57 }
 0x4c2   :  { %1129 = vmatmul.msk.f32.vlgmr.msra.gmra.mxu2 %vm891_vm1, %v880_v57 }
 0x53d   :  { %v912_v59 = vpop.f32.mrf.mxu2 }
 0x53e   :  { %v913_v8 = vadd.f32 %v1145_v58, %v912_v59 }
 0x540   :  { %917 = vadd.xlane.f32.xlu2 %v913_v8 }
 0x545   :  { %v1015_v60 = vpop.f32.mrf.mxu2 }
 0x546   :  { %v1016_v61 = vadd.f32 %v1146_v46, %v1015_v60  ;;  %v1147_v46 = vld [vmem:[%s1753_s11 + $0x48] ss:$0 sm:$0xff] }
 0x548   :  { %v1020_v62 = vsel %vm891_vm1, %v1016_v61, 0.0 }
 0x549   :  { %1021 = vadd.xlane.f32.xlu0 %v1020_v62 }
 0x5b3   :  { %v918_v23 = vpop.xlane.xlu2 %917 }
 0x5b4   :  { %v926_v20 = vmul.f32 %v925_v21, %v918_v23 }
 0x5b6   :  { %v927_v24 = vsub.f32 %v913_v8, %v926_v20 }
 0x5b8   :  { %v928_v27 = vmul.f32 %v927_v24, %v927_v24 }
 0x5ba   :  { %929 = vadd.xlane.f32.xlu1 %v928_v27 }
 0x5bc   :  { %v1022_v29 = vpop.xlane.xlu0 %1021 }
 0x5bd   :  { %v1030_v31 = vmul.f32 %v1029_v28, %v1022_v29 }
 0x5bf   :  { %v1672_v32 = vsub.f32 %v1016_v61, %v1030_v31 }
 0x5c1   :  { %v1032_v33 = vmul.f32 %v1672_v32, %v1672_v32 }
 0x5c3   :  { %v1033_v34 = vsel %vm891_vm1, %v1032_v33, 0.0 }
 0x5c4   :  { %1034 = vadd.xlane.f32.xlu2 %v1033_v34 }
 0x62d   :  { %v930_v44 = vpop.xlane.xlu1 %929 }
 0x62e   :  { %v931_v45 = vmul.f32 %v930_v44, %v925_v21 }
 0x630   :  { %v932_v49 = vadd.f32 1e-05, %v931_v45 }
 0x632   :  { %1189 = vrsqrt.f32 %v932_v49  ;;  %vm939_vm0 = vweird.f32 %v932_v49 }
 0x637   :  { %v1035_v51 = vpop.xlane.xlu2 %1034 }
 0x638   :  { %v1190_v25 = vpop.eup %1189  ;;  %v1036_v52 = vmul.f32 %v1035_v51, %v1029_v28 }
 0x639   :  { %v934_v53 = vmul.f32 %v1190_v25, %v932_v49  ;;  %vm940_vm15 = vweird.f32 %v1190_v25 }
 0x63a   :  { %v1037_v55 = vadd.f32 1e-05, %v1036_v52  ;;  %vm941_vm3 = vmor %vm939_vm0, %vm940_vm15 }
 0x63b   :  { %v935_v56 = vmul.f32 %v1190_v25, %v934_v53 }
 0x63c   :  { %1191 = vrsqrt.f32 %v1037_v55  ;;  %vm1044_vm5 = vweird.f32 %v1037_v55 }
 0x63d   :  { %v936_v57 = vmul.f32 0.5, %v935_v56 }
 0x63f   :  { %v937_v58 = vsub.f32 1.5, %v936_v57 }
 0x641   :  { %v938_v59 = vmul.f32 %v1190_v25, %v937_v58 }
 0x642   :  { %v1192_v8 = vpop.eup %1191 }
 0x643   :  { %v942_v60 = vsel %vm941_vm3, %v1190_v25, %v938_v59  ;;  %v1039_v61 = vmul.f32 %v1192_v8, %v1037_v55  ;;  %vm1045_vm4 = vweird.f32 %v1192_v8 }
 0x644   :  { %v943_v62 = vmul.f32 %v942_v60, %v927_v24  ;;  %vm1046_vm6 = vmor %vm1044_vm5, %vm1045_vm4 }
 0x645   :  { %v1040_v0 = vmul.f32 %v1192_v8, %v1039_v61 }
 0x646   :  { %v945_v1 = vmul.f32 %v1147_v46, %v943_v62 }
 0x647   :  { %v1041_v3 = vmul.f32 0.5, %v1040_v0 }
 0x648   :  { %v947_v4 = vadd.f32 %v1148_v63, %v945_v1 }
 0x649   :  { %v1042_v5 = vsub.f32 1.5, %v1041_v3 }
 0x64a   :  { %v948_v6 = vmax.f32 %v947_v4, 0.0 }
 0x64b   :  { %v1043_v7 = vmul.f32 %v1192_v8, %v1042_v5 }
 0x64c   :  { %983 = vmatmul.f32.vlgmr.msrb.gmra.mxu3 %v948_v6 }
 0x64d   :  { %v1047_v10 = vsel %vm1046_vm6, %v1192_v8, %v1043_v7 }
 0x64e   :  { %v1048_v11 = vmul.f32 %v1047_v10, %v1672_v32 }
 0x650   :  { %v1050_v12 = vmul.f32 %v1149_v9, %v1048_v11 }
 0x652   :  { %v1052_v13 = vadd.f32 %v1150_v38, %v1050_v12 }
 0x654   :  { %v1053_v14 = vmax.f32 %v1052_v13, 0.0 }
 0x656   :  { %1130 = vmatmul.msk.f32.vlgmr.msrb.gmra.mxu0 %vm891_vm1, %v1053_v14 }
 0x6cf   :  { %v984_v16 = vpop.f32.mrf.mxu3 }
 0x6d0   :  { %v985_v17 = vadd.f32 %v1151_v15, %v984_v16 }
 0x6d2   :  { %987 = vst [vmem:[%s1757_s15] sm:$0xff] %v985_v17 }
 0x6d3   :  { %v1084_v18 = vpop.f32.mrf.mxu0 }
 0x6d4   :  { %v1085_v19 = vadd.f32 %v1152_v30, %v1084_v18 }
 0x6d6   :  { %1087 = vst [vmem:[%s1758_s16] sm:$0xff] %v1085_v19 }
 0x6d7   :  { %1096 = vsyncpa [#allocation3], 1 }
 0x6d8   :  { %1097 = vsyncpa [#allocation5], 1 }

</bundles_post_ra>
